<compile_context>
chip_gen: v7x
topology: tpu7x:2x2x1
jax: 0.10.0
libtpu: 0.0.40
codegen_flags: <defaults>
</compile_context>

<pallas_src>
import math

import jax
import jax.numpy as jnp
from jax.experimental import pallas as pl
from jax.experimental.pallas import tpu as pltpu

# ---------------------------------------------------------------------------
# Model hyper-parameters (CNN_d defaults)
# ---------------------------------------------------------------------------
GROUP = 4
S = GROUP * GROUP          # num_patches = 16
INNER = 128                # inner_channel / embed_dims
D_IN = 256                 # first_layer Linear(256, 128)
PATCH_MIX = int(0.5 * S)   # 8
CHAN_MIX = 1 * INNER       # 128
LAYERSCALE = 0.001
LN_EPS = 1e-5
LEAKY_SLOPE = 0.2

_BT_CAP = 256                      # f32 batch tile cap (fits v7x's 64 MiB VMEM comfortably)
_VMEM_LIMIT = 48 * 1024 * 1024     # above v5e/v6e default scoped limits, below v7x physical


def _gelu_exact(v):
    # nn.GELU() default = exact erf-based GELU
    return 0.5 * v * (1.0 + jax.lax.erf(v * (1.0 / math.sqrt(2.0))))


def _layernorm(v, gamma, beta):
    mu = jnp.mean(v, axis=-1, keepdims=True)
    var = jnp.mean((v - mu) * (v - mu), axis=-1, keepdims=True)
    return (v - mu) * jax.lax.rsqrt(var + LN_EPS) * gamma + beta


def _pick_batch_tile(b):
    """Batch elements per grid step (rows per tile = bt * 16)."""
    if b <= 8:
        return b
    nb = max(2, -(-b // _BT_CAP))          # >= 2 grid steps so both v7x TCs get work
    bt = -(-b // nb)
    bt = min(_BT_CAP, -(-bt // 8) * 8)     # round up to a multiple of 8 batch elements
    return bt


def _const_spec(arr):
    """Whole (small) parameter array, identical for every grid step."""
    zeros = (0,) * arr.ndim
    return pl.BlockSpec(tuple(arr.shape), lambda b, _z=zeros: _z)


# ---------------------------------------------------------------------------
# Pallas kernel: full forward (first_layer -> MLP-mixer block + GELU -> final)
# for one batch tile (bt examples = bt*S rows) per grid step.
# ---------------------------------------------------------------------------
def _make_kernel(bt, has_c):
    rows = bt * S

    def kernel(*refs):
        it = iter(refs)
        x_ref = next(it)                            # (rows, DX)
        t_ref = next(it)                            # (rows, 1)   scaled time scalar
        c_ref = next(it) if has_c else None         # (rows, DC)
        w1x_ref = next(it)
        w1c_ref = next(it) if has_c else None
        w1t_ref = next(it)                          # (1, INNER) summed time-block rows
        b1_ref = next(it)
        g1_ref = next(it)
        be1_ref = next(it)
        wp1_ref = next(it)                          # (PATCH_MIX, S)
        bp1_ref = next(it)                          # (PATCH_MIX, 1)
        wp2_ref = next(it)                          # (S, PATCH_MIX)
        bp2_ref = next(it)                          # (S, 1)
        g2_ref = next(it)
        be2_ref = next(it)
        wc1_ref = next(it)
        bc1_ref = next(it)
        wc2_ref = next(it)
        bc2_ref = next(it)
        wf_ref = next(it)
        bf_ref = next(it)
        out_ref = next(it)                          # (rows, INNER)

        # ---- first_layer: split Linear(256,128) + LeakyReLU(0.2) ----
        h = jnp.dot(x_ref[...], w1x_ref[...], preferred_element_type=jnp.float32)
        if has_c:
            h = h + jnp.dot(c_ref[...], w1c_ref[...], preferred_element_type=jnp.float32)
        h = h + t_ref[...] * w1t_ref[...] + b1_ref[...]          # (rows, INNER)
        h = jnp.where(h >= 0.0, h, LEAKY_SLOPE * h)

        # ---- MLP mixer: patch-mixing branch (lane-dense, transpose-free) ----
        n1 = _layernorm(h, g1_ref[...], be1_ref[...])
        n1_3 = n1.reshape(bt, S, INNER)
        wp1b = jnp.broadcast_to(wp1_ref[...], (bt, PATCH_MIX, S))
        p = jnp.einsum("bps,bsd->bpd", wp1b, n1_3,
                       preferred_element_type=jnp.float32) + bp1_ref[...]
        p = _gelu_exact(p)                                        # (bt, PATCH_MIX, INNER)
        wp2b = jnp.broadcast_to(wp2_ref[...], (bt, S, PATCH_MIX))
        q = jnp.einsum("bsp,bpd->bsd", wp2b, p,
                       preferred_element_type=jnp.float32) + bp2_ref[...]
        h = h + q.reshape(rows, INNER)

        # ---- MLP mixer: channel-mixing branch ----
        n2 = _layernorm(h, g2_ref[...], be2_ref[...])
        cm = jnp.dot(n2, wc1_ref[...], preferred_element_type=jnp.float32) + bc1_ref[...]
        cm = _gelu_exact(cm)
        cm = jnp.dot(cm, wc2_ref[...], preferred_element_type=jnp.float32) + bc2_ref[...]
        h = h + cm

        # trailing GELU of the block Sequential
        h = _gelu_exact(h)

        # ---- final_layer: Linear(128,128) + GELU ----
        o = jnp.dot(h, wf_ref[...], preferred_element_type=jnp.float32) + bf_ref[...]
        o = _gelu_exact(o)

        out_ref[...] = o.astype(out_ref.dtype)

    return kernel


# ---------------------------------------------------------------------------
# Wrapper
# ---------------------------------------------------------------------------
@jax.jit
def cnn_d_forward(x, c, time, params):
    f32 = jnp.float32
    B, S_, DX = x.shape
    assert S_ == S, f"expected num_patches={S}, got {S_}"

    x = x.astype(f32)
    time = time.astype(f32)
    tm = params["time_mlp"].astype(f32).reshape(())

    w1 = params["w1"].astype(f32)                    # (256, 128) = (in, out)
    w1x = w1[:DX]
    w1t = w1[DX:2 * DX]
    w1t_sum = jnp.sum(w1t, axis=0, keepdims=True)    # (1, INNER)

    if c is not None:
        c = c.astype(f32)
        DC = c.shape[-1]
        assert 2 * DX + DC == w1.shape[0], "x/time/c feature dims must sum to 256"
        w1c = w1[2 * DX:]
    else:
        DC = 0
        assert 2 * DX == w1.shape[0], "x/time feature dims must sum to 256"
        w1c = None

    # --- fold the time input into the kernel's streams (no concat in HBM) ---
    if time.ndim == 2:
        # broadcast-repeat path: the time block of the concat collapses to a
        # per-(b,s) scalar times the summed time-block weight rows.
        tscale = (time * tm)[:, :, None]             # (B, S, 1)
        dense_c, w_dense_c = c, w1c
    else:
        # pre-expanded 3-D time: fold (time * scale) into the dense conditioning stream.
        tfull = time * tm
        tscale = jnp.zeros((B, S, 1), f32)
        if c is not None:
            dense_c = jnp.concatenate([tfull, c], axis=-1)
            w_dense_c = jnp.concatenate([w1t, w1c], axis=0)
        else:
            dense_c, w_dense_c = tfull, w1t
    dc = 0 if dense_c is None else dense_c.shape[-1]
    has_c = dc > 0

    # --- batch tiling (free row-major reshapes outside the kernel) ---
    bt = _pick_batch_tile(B)
    nb = -(-B // bt)
    Bp = nb * bt
    rows = bt * S
    rows_total = Bp * S

    x2 = x.reshape(B * S, DX)
    t2 = tscale.reshape(B * S, 1)
    c2 = None if not has_c else dense_c.reshape(B * S, dc)
    if Bp != B:
        pad = ((0, (Bp - B) * S), (0, 0))
        x2 = jnp.pad(x2, pad)
        t2 = jnp.pad(t2, pad)
        if c2 is not None:
            c2 = jnp.pad(c2, pad)

    # --- kernel-layout weights (transposed patch mixer, column biases) ---
    wp1_t = params["wp1"].astype(f32).T              # (PATCH_MIX, S)
    wp2_t = params["wp2"].astype(f32).T              # (S, PATCH_MIX)
    bp1_c = params["bp1"].astype(f32).reshape(PATCH_MIX, 1)
    bp2_c = params["bp2"].astype(f32).reshape(S, 1)

    acts = [x2, t2] + ([c2] if has_c else [])
    act_specs = [
        pl.BlockSpec((rows, DX), lambda b: (b, 0)),
        pl.BlockSpec((rows, 1), lambda b: (b, 0)),
    ]
    if has_c:
        act_specs.append(pl.BlockSpec((rows, dc), lambda b: (b, 0)))

    weights = [w1x]
    if has_c:
        weights.append(w_dense_c)
    weights += [
        w1t_sum, params["b1"].astype(f32),
        params["g1"].astype(f32), params["be1"].astype(f32),
        wp1_t, bp1_c, wp2_t, bp2_c,
        params["g2"].astype(f32), params["be2"].astype(f32),
        params["wc1"].astype(f32), params["bc1"].astype(f32),
        params["wc2"].astype(f32), params["bc2"].astype(f32),
        params["wf"].astype(f32), params["bf"].astype(f32),
    ]
    w_specs = [_const_spec(w) for w in weights]

    # advisory cost estimate for the surrounding XLA schedule
    flops = (2 * rows_total * (DX * INNER + dc * INNER + 2 * CHAN_MIX * INNER + INNER * INNER)
             + 4 * Bp * S * PATCH_MIX * INNER)
    transcendentals = Bp * PATCH_MIX * INNER + 3 * rows_total * INNER
    bytes_accessed = 4 * (sum(a.size for a in acts) + rows_total * INNER
                          + sum(w.size for w in weights))

    out2 = pl.pallas_call(
        _make_kernel(bt, has_c),
        out_shape=jax.ShapeDtypeStruct((rows_total, INNER), f32),
        grid_spec=pltpu.PrefetchScalarGridSpec(
            num_scalar_prefetch=0,
            grid=(nb,),
            in_specs=act_specs + w_specs,
            out_specs=pl.BlockSpec((rows, INNER), lambda b: (b, 0)),
        ),
        compiler_params=pltpu.CompilerParams(
            dimension_semantics=("parallel",),
            vmem_limit_bytes=_VMEM_LIMIT,
        ),
        cost_estimate=pl.CostEstimate(
            flops=flops, transcendentals=transcendentals, bytes_accessed=bytes_accessed),
    )(*(acts + weights))

    if Bp != B:
        out2 = out2[:B * S]
    return out2.reshape(B, S, INNER)


# ---------------------------------------------------------------------------
# Pure-JAX reference (mirrors the PyTorch forward) for self-checking
# ---------------------------------------------------------------------------
def cnn_d_reference(x, c, time, params):
    f32 = jnp.float32
    hp = jax.lax.Precision.HIGHEST
    x = x.astype(f32)
    if time.ndim == 2:
        time = jnp.broadcast_to(time[:, :, None], time.shape + (x.shape[-1],))
    t = time.astype(f32) * params["time_mlp"].astype(f32)
    parts = [x, t] + ([c.astype(f32)] if c is not None else [])
    xcat = jnp.concatenate(parts, axis=-1)

    h = jnp.dot(xcat, params["w1"], precision=hp) + params["b1"]
    h = jnp.where(h >= 0.0, h, LEAKY_SLOPE * h)

    n1 = _layernorm(h, params["g1"], params["be1"])
    pm = jnp.swapaxes(n1, 1, 2)                                        # (B, D, S)
    pm = jnp.dot(pm, params["wp1"], precision=hp) + params["bp1"]
    pm = _gelu_exact(pm)
    pm = jnp.dot(pm, params["wp2"], precision=hp) + params["bp2"]
    h = h + jnp.swapaxes(pm, 1, 2)

    n2 = _layernorm(h, params["g2"], params["be2"])
    cm = jnp.dot(n2, params["wc1"], precision=hp) + params["bc1"]
    cm = _gelu_exact(cm)
    cm = jnp.dot(cm, params["wc2"], precision=hp) + params["bc2"]
    h = _gelu_exact(h + cm)

    o = jnp.dot(h, params["wf"], precision=hp) + params["bf"]
    return _gelu_exact(o)


# ---------------------------------------------------------------------------
# Deterministic parameter construction (synthetic — no checkpoint load)
# ---------------------------------------------------------------------------
def make_params(key):
    keys = jax.random.split(key, 8)
    scale = 0.02

    def w(k, shape):
        return scale * jax.random.normal(k, shape, dtype=jnp.float32)

    return {
        "time_mlp": jnp.full((1,), LAYERSCALE, dtype=jnp.float32),
        # first_layer Linear(256, 128): stored (in, out)
        "w1": w(keys[0], (D_IN, INNER)),
        "b1": jnp.zeros((1, INNER), jnp.float32),
        # MLP block LayerNorms
        "g1": jnp.ones((1, INNER), jnp.float32),
        "be1": jnp.zeros((1, INNER), jnp.float32),
        "g2": jnp.ones((1, INNER), jnp.float32),
        "be2": jnp.zeros((1, INNER), jnp.float32),
        # patch_mixer: Linear(16, 8), Linear(8, 16)  -- stored (in, out)
        "wp1": w(keys[1], (S, PATCH_MIX)),
        "bp1": jnp.zeros((1, PATCH_MIX), jnp.float32),
        "wp2": w(keys[2], (PATCH_MIX, S)),
        "bp2": jnp.zeros((1, S), jnp.float32),
        # channel_mixer: Linear(128, 128), Linear(128, 128)
        "wc1": w(keys[3], (INNER, CHAN_MIX)),
        "bc1": jnp.zeros((1, CHAN_MIX), jnp.float32),
        "wc2": w(keys[4], (CHAN_MIX, INNER)),
        "bc2": jnp.zeros((1, INNER), jnp.float32),
        # final_layer Linear(128, 128)
        "wf": w(keys[5], (INNER, INNER)),
        "bf": jnp.zeros((1, INNER), jnp.float32),
    }


if __name__ == "__main__":
    key = jax.random.PRNGKey(0)
    kx, kc, kt, kp = jax.random.split(key, 4)

    B = 2
    DX = 96   # x feature dim
    DC = 64   # conditioning feature dim; DX + DX + DC = 256 = first_layer input

    x = jax.random.normal(kx, (B, S, DX), dtype=jnp.float32)
    c = jax.random.normal(kc, (B, S, DC), dtype=jnp.float32)
    time = jax.random.normal(kt, (B, S), dtype=jnp.float32)   # 2-D -> scalar-collapsed path
    params = make_params(kp)

    out = cnn_d_forward(x, c, time, params)
    jax.block_until_ready(out)
    assert out.shape == (B, S, INNER)

    ref = cnn_d_reference(x, c, time, params)
    err = float(jnp.max(jnp.abs(out - ref)))
    assert err < 2e-3, f"kernel/reference mismatch: {err}"

    # Exercise the multi-tile (padded, 2-grid-step) path as well.
    B2 = 20
    kx2, kc2, kt2 = jax.random.split(kx, 3)
    x2 = jax.random.normal(kx2, (B2, S, DX), dtype=jnp.float32)
    c2 = jax.random.normal(kc2, (B2, S, DC), dtype=jnp.float32)
    t2 = jax.random.normal(kt2, (B2, S), dtype=jnp.float32)
    out2 = cnn_d_forward(x2, c2, t2, params)
    jax.block_until_ready(out2)
    ref2 = cnn_d_reference(x2, c2, t2, params)
    err2 = float(jnp.max(jnp.abs(out2 - ref2)))
    assert err2 < 2e-3, f"multi-tile kernel/reference mismatch: {err2}"

    print("KERNEL_OK")
</pallas_src>

<mosaic_0001>
module attributes {stable_mosaic.version = 11 : i64} {
  func.func @kernel(%arg0: i32, %arg1: memref<32x96xf32, #tpu.memory_space<vmem>>, %arg2: memref<32x1xf32, #tpu.memory_space<vmem>>, %arg3: memref<32x64xf32, #tpu.memory_space<vmem>>, %arg4: memref<96x128xf32, #tpu.memory_space<vmem>>, %arg5: memref<64x128xf32, #tpu.memory_space<vmem>>, %arg6: memref<1x128xf32, #tpu.memory_space<vmem>>, %arg7: memref<1x128xf32, #tpu.memory_space<vmem>>, %arg8: memref<1x128xf32, #tpu.memory_space<vmem>>, %arg9: memref<1x128xf32, #tpu.memory_space<vmem>>, %arg10: memref<8x16xf32, #tpu.memory_space<vmem>>, %arg11: memref<8x1xf32, #tpu.memory_space<vmem>>, %arg12: memref<16x8xf32, #tpu.memory_space<vmem>>, %arg13: memref<16x1xf32, #tpu.memory_space<vmem>>, %arg14: memref<1x128xf32, #tpu.memory_space<vmem>>, %arg15: memref<1x128xf32, #tpu.memory_space<vmem>>, %arg16: memref<128x128xf32, #tpu.memory_space<vmem>>, %arg17: memref<1x128xf32, #tpu.memory_space<vmem>>, %arg18: memref<128x128xf32, #tpu.memory_space<vmem>>, %arg19: memref<1x128xf32, #tpu.memory_space<vmem>>, %arg20: memref<128x128xf32, #tpu.memory_space<vmem>>, %arg21: memref<1x128xf32, #tpu.memory_space<vmem>>, %arg22: memref<32x128xf32, #tpu.memory_space<vmem>>) attributes {dimension_semantics = [#tpu.dimension_semantics<parallel>], iteration_bounds = array<i64: 1>, scalar_prefetch = 0 : i64, scratch_operands = 0 : i64, tpu.core_type = #tpu.core_type<tc>, window_params = [{transform_indices = @transform_0, window_bounds = array<i64: 32, 96>}, {transform_indices = @transform_1, window_bounds = array<i64: 32, 1>}, {transform_indices = @transform_2, window_bounds = array<i64: 32, 64>}, {pipeline_mode = #tpu.pipeline_mode<synchronous>, transform_indices = @transform_3, window_bounds = array<i64: 96, 128>}, {pipeline_mode = #tpu.pipeline_mode<synchronous>, transform_indices = @transform_4, window_bounds = array<i64: 64, 128>}, {pipeline_mode = #tpu.pipeline_mode<synchronous>, transform_indices = @transform_5, window_bounds = array<i64: 1, 128>}, {pipeline_mode = #tpu.pipeline_mode<synchronous>, transform_indices = @transform_6, window_bounds = array<i64: 1, 128>}, {pipeline_mode = #tpu.pipeline_mode<synchronous>, transform_indices = @transform_7, window_bounds = array<i64: 1, 128>}, {pipeline_mode = #tpu.pipeline_mode<synchronous>, transform_indices = @transform_8, window_bounds = array<i64: 1, 128>}, {pipeline_mode = #tpu.pipeline_mode<synchronous>, transform_indices = @transform_9, window_bounds = array<i64: 8, 16>}, {pipeline_mode = #tpu.pipeline_mode<synchronous>, transform_indices = @transform_10, window_bounds = array<i64: 8, 1>}, {pipeline_mode = #tpu.pipeline_mode<synchronous>, transform_indices = @transform_11, window_bounds = array<i64: 16, 8>}, {pipeline_mode = #tpu.pipeline_mode<synchronous>, transform_indices = @transform_12, window_bounds = array<i64: 16, 1>}, {pipeline_mode = #tpu.pipeline_mode<synchronous>, transform_indices = @transform_13, window_bounds = array<i64: 1, 128>}, {pipeline_mode = #tpu.pipeline_mode<synchronous>, transform_indices = @transform_14, window_bounds = array<i64: 1, 128>}, {pipeline_mode = #tpu.pipeline_mode<synchronous>, transform_indices = @transform_15, window_bounds = array<i64: 128, 128>}, {pipeline_mode = #tpu.pipeline_mode<synchronous>, transform_indices = @transform_16, window_bounds = array<i64: 1, 128>}, {pipeline_mode = #tpu.pipeline_mode<synchronous>, transform_indices = @transform_17, window_bounds = array<i64: 128, 128>}, {pipeline_mode = #tpu.pipeline_mode<synchronous>, transform_indices = @transform_18, window_bounds = array<i64: 1, 128>}, {pipeline_mode = #tpu.pipeline_mode<synchronous>, transform_indices = @transform_19, window_bounds = array<i64: 128, 128>}, {pipeline_mode = #tpu.pipeline_mode<synchronous>, transform_indices = @transform_20, window_bounds = array<i64: 1, 128>}, {transform_indices = @transform_21, window_bounds = array<i64: 32, 128>}]} {
    %c0 = arith.constant 0 : index
    %c0_0 = arith.constant 0 : index
    %0 = vector.load %arg1[%c0, %c0_0] : memref<32x96xf32, #tpu.memory_space<vmem>>, vector<32x96xf32>
    %c0_1 = arith.constant 0 : index
    %c0_2 = arith.constant 0 : index
    %1 = vector.load %arg4[%c0_1, %c0_2] : memref<96x128xf32, #tpu.memory_space<vmem>>, vector<96x128xf32>
    %cst = arith.constant dense<0.000000e+00> : vector<32x128xf32>
    %2 = tpu.matmul %0, %1, %cst {dimension_numbers = #tpu.dot_dimension_numbers<[1], [0], [0], [1], [0, 0, 1, 1], [], []>} : vector<32x96xf32>, vector<96x128xf32>, vector<32x128xf32> -> vector<32x128xf32>
    %c0_3 = arith.constant 0 : index
    %c0_4 = arith.constant 0 : index
    %3 = vector.load %arg3[%c0_3, %c0_4] : memref<32x64xf32, #tpu.memory_space<vmem>>, vector<32x64xf32>
    %c0_5 = arith.constant 0 : index
    %c0_6 = arith.constant 0 : index
    %4 = vector.load %arg5[%c0_5, %c0_6] : memref<64x128xf32, #tpu.memory_space<vmem>>, vector<64x128xf32>
    %cst_7 = arith.constant dense<0.000000e+00> : vector<32x128xf32>
    %5 = tpu.matmul %3, %4, %cst_7 {dimension_numbers = #tpu.dot_dimension_numbers<[1], [0], [0], [1], [0, 0, 1, 1], [], []>} : vector<32x64xf32>, vector<64x128xf32>, vector<32x128xf32> -> vector<32x128xf32>
    %6 = arith.addf %2, %5 : vector<32x128xf32>
    %c0_8 = arith.constant 0 : index
    %c0_9 = arith.constant 0 : index
    %7 = vector.load %arg2[%c0_8, %c0_9] : memref<32x1xf32, #tpu.memory_space<vmem>>, vector<32x1xf32>
    %c0_10 = arith.constant 0 : index
    %c0_11 = arith.constant 0 : index
    %8 = vector.load %arg6[%c0_10, %c0_11] : memref<1x128xf32, #tpu.memory_space<vmem>>, vector<1x128xf32>
    %9 = vector.broadcast %7 : vector<32x1xf32> to vector<32x128xf32>
    %10 = vector.broadcast %8 : vector<1x128xf32> to vector<32x128xf32>
    %11 = arith.mulf %9, %10 : vector<32x128xf32>
    %12 = arith.addf %6, %11 : vector<32x128xf32>
    %c0_12 = arith.constant 0 : index
    %c0_13 = arith.constant 0 : index
    %13 = vector.load %arg7[%c0_12, %c0_13] : memref<1x128xf32, #tpu.memory_space<vmem>>, vector<1x128xf32>
    %14 = vector.broadcast %13 : vector<1x128xf32> to vector<32x128xf32>
    %15 = arith.addf %12, %14 : vector<32x128xf32>
    %cst_14 = arith.constant 0.000000e+00 : f32
    %16 = vector.broadcast %cst_14 : f32 to vector<32x128xf32>
    %17 = arith.cmpf oge, %15, %16 : vector<32x128xf32>
    %cst_15 = arith.constant 2.000000e-01 : f32
    %18 = vector.broadcast %cst_15 : f32 to vector<32x128xf32>
    %19 = arith.mulf %18, %15 : vector<32x128xf32>
    %20 = arith.select %17, %15, %19 : vector<32x128xi1>, vector<32x128xf32>
    %c0_16 = arith.constant 0 : index
    %c0_17 = arith.constant 0 : index
    %21 = vector.load %arg8[%c0_16, %c0_17] : memref<1x128xf32, #tpu.memory_space<vmem>>, vector<1x128xf32>
    %c0_18 = arith.constant 0 : index
    %c0_19 = arith.constant 0 : index
    %22 = vector.load %arg9[%c0_18, %c0_19] : memref<1x128xf32, #tpu.memory_space<vmem>>, vector<1x128xf32>
    %cst_20 = arith.constant dense<0.000000e+00> : vector<32xf32>
    %23 = vector.multi_reduction <add>, %20, %cst_20 [1] : vector<32x128xf32> to vector<32xf32>
    %24 = vector.shape_cast %23 : vector<32xf32> to vector<32x1xf32>
    %cst_21 = arith.constant 1.280000e+02 : f32
    %25 = vector.broadcast %cst_21 : f32 to vector<32x1xf32>
    %26 = arith.divf %24, %25 : vector<32x1xf32>
    %27 = vector.broadcast %26 : vector<32x1xf32> to vector<32x128xf32>
    %28 = arith.subf %20, %27 : vector<32x128xf32>
    %29 = vector.broadcast %26 : vector<32x1xf32> to vector<32x128xf32>
    %30 = arith.subf %20, %29 : vector<32x128xf32>
    %31 = arith.mulf %28, %30 : vector<32x128xf32>
    %cst_22 = arith.constant dense<0.000000e+00> : vector<32xf32>
    %32 = vector.multi_reduction <add>, %31, %cst_22 [1] : vector<32x128xf32> to vector<32xf32>
    %33 = vector.shape_cast %32 : vector<32xf32> to vector<32x1xf32>
    %cst_23 = arith.constant 1.280000e+02 : f32
    %34 = vector.broadcast %cst_23 : f32 to vector<32x1xf32>
    %35 = arith.divf %33, %34 : vector<32x1xf32>
    %36 = vector.broadcast %26 : vector<32x1xf32> to vector<32x128xf32>
    %37 = arith.subf %20, %36 : vector<32x128xf32>
    %cst_24 = arith.constant 9.99999974E-6 : f32
    %38 = vector.broadcast %cst_24 : f32 to vector<32x1xf32>
    %39 = arith.addf %35, %38 : vector<32x1xf32>
    %40 = math.rsqrt %39 : vector<32x1xf32>
    %41 = vector.broadcast %40 : vector<32x1xf32> to vector<32x128xf32>
    %42 = arith.mulf %37, %41 : vector<32x128xf32>
    %43 = vector.broadcast %21 : vector<1x128xf32> to vector<32x128xf32>
    %44 = arith.mulf %42, %43 : vector<32x128xf32>
    %45 = vector.broadcast %22 : vector<1x128xf32> to vector<32x128xf32>
    %46 = arith.addf %44, %45 : vector<32x128xf32>
    %47 = vector.shape_cast %46 : vector<32x128xf32> to vector<2x16x128xf32>
    %c0_25 = arith.constant 0 : index
    %c0_26 = arith.constant 0 : index
    %48 = vector.load %arg10[%c0_25, %c0_26] : memref<8x16xf32, #tpu.memory_space<vmem>>, vector<8x16xf32>
    %49 = vector.shape_cast %48 : vector<8x16xf32> to vector<1x8x16xf32>
    %50 = vector.broadcast %49 : vector<1x8x16xf32> to vector<2x8x16xf32>
    "tpu.trace_start"() <{level = 10 : i32, message = "bps,bsd->bpd"}> : () -> ()
    %cst_27 = arith.constant dense<0.000000e+00> : vector<2x8x128xf32>
    %51 = tpu.matmul %50, %47, %cst_27 {dimension_numbers = #tpu.dot_dimension_numbers<[2], [1], [1], [2], [0, 0, 0, 1, 1, 2], [0], [0]>} : vector<2x8x16xf32>, vector<2x16x128xf32>, vector<2x8x128xf32> -> vector<2x8x128xf32>
    "tpu.trace_stop"() : () -> ()
    %c0_28 = arith.constant 0 : index
    %c0_29 = arith.constant 0 : index
    %52 = vector.load %arg11[%c0_28, %c0_29] : memref<8x1xf32, #tpu.memory_space<vmem>>, vector<8x1xf32>
    %53 = vector.shape_cast %52 : vector<8x1xf32> to vector<1x8x1xf32>
    %54 = vector.broadcast %53 : vector<1x8x1xf32> to vector<2x8x128xf32>
    %55 = arith.addf %51, %54 : vector<2x8x128xf32>
    %cst_30 = arith.constant 5.000000e-01 : f32
    %56 = vector.broadcast %cst_30 : f32 to vector<2x8x128xf32>
    %57 = arith.mulf %56, %55 : vector<2x8x128xf32>
    %cst_31 = arith.constant 0.707106769 : f32
    %58 = vector.broadcast %cst_31 : f32 to vector<2x8x128xf32>
    %59 = arith.mulf %55, %58 : vector<2x8x128xf32>
    %60 = math.erf %59 : vector<2x8x128xf32>
    %cst_32 = arith.constant 1.000000e+00 : f32
    %61 = vector.broadcast %cst_32 : f32 to vector<2x8x128xf32>
    %62 = arith.addf %61, %60 : vector<2x8x128xf32>
    %63 = arith.mulf %57, %62 : vector<2x8x128xf32>
    %c0_33 = arith.constant 0 : index
    %c0_34 = arith.constant 0 : index
    %64 = vector.load %arg12[%c0_33, %c0_34] : memref<16x8xf32, #tpu.memory_space<vmem>>, vector<16x8xf32>
    %65 = vector.shape_cast %64 : vector<16x8xf32> to vector<1x16x8xf32>
    %66 = vector.broadcast %65 : vector<1x16x8xf32> to vector<2x16x8xf32>
    "tpu.trace_start"() <{level = 10 : i32, message = "bsp,bpd->bsd"}> : () -> ()
    %cst_35 = arith.constant dense<0.000000e+00> : vector<2x16x128xf32>
    %67 = tpu.matmul %66, %63, %cst_35 {dimension_numbers = #tpu.dot_dimension_numbers<[2], [1], [1], [2], [0, 0, 0, 1, 1, 2], [0], [0]>} : vector<2x16x8xf32>, vector<2x8x128xf32>, vector<2x16x128xf32> -> vector<2x16x128xf32>
    "tpu.trace_stop"() : () -> ()
    %c0_36 = arith.constant 0 : index
    %c0_37 = arith.constant 0 : index
    %68 = vector.load %arg13[%c0_36, %c0_37] : memref<16x1xf32, #tpu.memory_space<vmem>>, vector<16x1xf32>
    %69 = vector.shape_cast %68 : vector<16x1xf32> to vector<1x16x1xf32>
    %70 = vector.broadcast %69 : vector<1x16x1xf32> to vector<2x16x128xf32>
    %71 = arith.addf %67, %70 : vector<2x16x128xf32>
    %72 = vector.shape_cast %71 : vector<2x16x128xf32> to vector<32x128xf32>
    %73 = arith.addf %20, %72 : vector<32x128xf32>
    %c0_38 = arith.constant 0 : index
    %c0_39 = arith.constant 0 : index
    %74 = vector.load %arg14[%c0_38, %c0_39] : memref<1x128xf32, #tpu.memory_space<vmem>>, vector<1x128xf32>
    %c0_40 = arith.constant 0 : index
    %c0_41 = arith.constant 0 : index
    %75 = vector.load %arg15[%c0_40, %c0_41] : memref<1x128xf32, #tpu.memory_space<vmem>>, vector<1x128xf32>
    %cst_42 = arith.constant dense<0.000000e+00> : vector<32xf32>
    %76 = vector.multi_reduction <add>, %73, %cst_42 [1] : vector<32x128xf32> to vector<32xf32>
    %77 = vector.shape_cast %76 : vector<32xf32> to vector<32x1xf32>
    %cst_43 = arith.constant 1.280000e+02 : f32
    %78 = vector.broadcast %cst_43 : f32 to vector<32x1xf32>
    %79 = arith.divf %77, %78 : vector<32x1xf32>
    %80 = vector.broadcast %79 : vector<32x1xf32> to vector<32x128xf32>
    %81 = arith.subf %73, %80 : vector<32x128xf32>
    %82 = vector.broadcast %79 : vector<32x1xf32> to vector<32x128xf32>
    %83 = arith.subf %73, %82 : vector<32x128xf32>
    %84 = arith.mulf %81, %83 : vector<32x128xf32>
    %cst_44 = arith.constant dense<0.000000e+00> : vector<32xf32>
    %85 = vector.multi_reduction <add>, %84, %cst_44 [1] : vector<32x128xf32> to vector<32xf32>
    %86 = vector.shape_cast %85 : vector<32xf32> to vector<32x1xf32>
    %cst_45 = arith.constant 1.280000e+02 : f32
    %87 = vector.broadcast %cst_45 : f32 to vector<32x1xf32>
    %88 = arith.divf %86, %87 : vector<32x1xf32>
    %89 = vector.broadcast %79 : vector<32x1xf32> to vector<32x128xf32>
    %90 = arith.subf %73, %89 : vector<32x128xf32>
    %cst_46 = arith.constant 9.99999974E-6 : f32
    %91 = vector.broadcast %cst_46 : f32 to vector<32x1xf32>
    %92 = arith.addf %88, %91 : vector<32x1xf32>
    %93 = math.rsqrt %92 : vector<32x1xf32>
    %94 = vector.broadcast %93 : vector<32x1xf32> to vector<32x128xf32>
    %95 = arith.mulf %90, %94 : vector<32x128xf32>
    %96 = vector.broadcast %74 : vector<1x128xf32> to vector<32x128xf32>
    %97 = arith.mulf %95, %96 : vector<32x128xf32>
    %98 = vector.broadcast %75 : vector<1x128xf32> to vector<32x128xf32>
    %99 = arith.addf %97, %98 : vector<32x128xf32>
    %c0_47 = arith.constant 0 : index
    %c0_48 = arith.constant 0 : index
    %100 = vector.load %arg16[%c0_47, %c0_48] : memref<128x128xf32, #tpu.memory_space<vmem>>, vector<128x128xf32>
    %cst_49 = arith.constant dense<0.000000e+00> : vector<32x128xf32>
    %101 = tpu.matmul %99, %100, %cst_49 {dimension_numbers = #tpu.dot_dimension_numbers<[1], [0], [0], [1], [0, 0, 1, 1], [], []>} : vector<32x128xf32>, vector<128x128xf32>, vector<32x128xf32> -> vector<32x128xf32>
    %c0_50 = arith.constant 0 : index
    %c0_51 = arith.constant 0 : index
    %102 = vector.load %arg17[%c0_50, %c0_51] : memref<1x128xf32, #tpu.memory_space<vmem>>, vector<1x128xf32>
    %103 = vector.broadcast %102 : vector<1x128xf32> to vector<32x128xf32>
    %104 = arith.addf %101, %103 : vector<32x128xf32>
    %cst_52 = arith.constant 5.000000e-01 : f32
    %105 = vector.broadcast %cst_52 : f32 to vector<32x128xf32>
    %106 = arith.mulf %105, %104 : vector<32x128xf32>
    %cst_53 = arith.constant 0.707106769 : f32
    %107 = vector.broadcast %cst_53 : f32 to vector<32x128xf32>
    %108 = arith.mulf %104, %107 : vector<32x128xf32>
    %109 = math.erf %108 : vector<32x128xf32>
    %cst_54 = arith.constant 1.000000e+00 : f32
    %110 = vector.broadcast %cst_54 : f32 to vector<32x128xf32>
    %111 = arith.addf %110, %109 : vector<32x128xf32>
    %112 = arith.mulf %106, %111 : vector<32x128xf32>
    %c0_55 = arith.constant 0 : index
    %c0_56 = arith.constant 0 : index
    %113 = vector.load %arg18[%c0_55, %c0_56] : memref<128x128xf32, #tpu.memory_space<vmem>>, vector<128x128xf32>
    %cst_57 = arith.constant dense<0.000000e+00> : vector<32x128xf32>
    %114 = tpu.matmul %112, %113, %cst_57 {dimension_numbers = #tpu.dot_dimension_numbers<[1], [0], [0], [1], [0, 0, 1, 1], [], []>} : vector<32x128xf32>, vector<128x128xf32>, vector<32x128xf32> -> vector<32x128xf32>
    %c0_58 = arith.constant 0 : index
    %c0_59 = arith.constant 0 : index
    %115 = vector.load %arg19[%c0_58, %c0_59] : memref<1x128xf32, #tpu.memory_space<vmem>>, vector<1x128xf32>
    %116 = vector.broadcast %115 : vector<1x128xf32> to vector<32x128xf32>
    %117 = arith.addf %114, %116 : vector<32x128xf32>
    %118 = arith.addf %73, %117 : vector<32x128xf32>
    %cst_60 = arith.constant 5.000000e-01 : f32
    %119 = vector.broadcast %cst_60 : f32 to vector<32x128xf32>
    %120 = arith.mulf %119, %118 : vector<32x128xf32>
    %cst_61 = arith.constant 0.707106769 : f32
    %121 = vector.broadcast %cst_61 : f32 to vector<32x128xf32>
    %122 = arith.mulf %118, %121 : vector<32x128xf32>
    %123 = math.erf %122 : vector<32x128xf32>
    %cst_62 = arith.constant 1.000000e+00 : f32
    %124 = vector.broadcast %cst_62 : f32 to vector<32x128xf32>
    %125 = arith.addf %124, %123 : vector<32x128xf32>
    %126 = arith.mulf %120, %125 : vector<32x128xf32>
    %c0_63 = arith.constant 0 : index
    %c0_64 = arith.constant 0 : index
    %127 = vector.load %arg20[%c0_63, %c0_64] : memref<128x128xf32, #tpu.memory_space<vmem>>, vector<128x128xf32>
    %cst_65 = arith.constant dense<0.000000e+00> : vector<32x128xf32>
    %128 = tpu.matmul %126, %127, %cst_65 {dimension_numbers = #tpu.dot_dimension_numbers<[1], [0], [0], [1], [0, 0, 1, 1], [], []>} : vector<32x128xf32>, vector<128x128xf32>, vector<32x128xf32> -> vector<32x128xf32>
    %c0_66 = arith.constant 0 : index
    %c0_67 = arith.constant 0 : index
    %129 = vector.load %arg21[%c0_66, %c0_67] : memref<1x128xf32, #tpu.memory_space<vmem>>, vector<1x128xf32>
    %130 = vector.broadcast %129 : vector<1x128xf32> to vector<32x128xf32>
    %131 = arith.addf %128, %130 : vector<32x128xf32>
    %cst_68 = arith.constant 5.000000e-01 : f32
    %132 = vector.broadcast %cst_68 : f32 to vector<32x128xf32>
    %133 = arith.mulf %132, %131 : vector<32x128xf32>
    %cst_69 = arith.constant 0.707106769 : f32
    %134 = vector.broadcast %cst_69 : f32 to vector<32x128xf32>
    %135 = arith.mulf %131, %134 : vector<32x128xf32>
    %136 = math.erf %135 : vector<32x128xf32>
    %cst_70 = arith.constant 1.000000e+00 : f32
    %137 = vector.broadcast %cst_70 : f32 to vector<32x128xf32>
    %138 = arith.addf %137, %136 : vector<32x128xf32>
    %139 = arith.mulf %133, %138 : vector<32x128xf32>
    %c0_71 = arith.constant 0 : index
    %c0_72 = arith.constant 0 : index
    %140 = vector.load %arg22[%c0_71, %c0_72] : memref<32x128xf32, #tpu.memory_space<vmem>>, vector<32x128xf32>
    tpu.vector_store %arg22[%c0_71, %c0_72], %139 {strides = array<i32>} : memref<32x128xf32, #tpu.memory_space<vmem>>, vector<32x128xf32>,
    return
  }
  func.func @transform_0(%arg0: i32) -> (i32, i32) {
    %c0_i32 = arith.constant 0 : i32
    %c0_i32_0 = arith.constant 0 : i32
    return %arg0, %c0_i32 : i32, i32
  }
  func.func @transform_1(%arg0: i32) -> (i32, i32) {
    %c0_i32 = arith.constant 0 : i32
    %c0_i32_0 = arith.constant 0 : i32
    return %arg0, %c0_i32 : i32, i32
  }
  func.func @transform_2(%arg0: i32) -> (i32, i32) {
    %c0_i32 = arith.constant 0 : i32
    %c0_i32_0 = arith.constant 0 : i32
    return %arg0, %c0_i32 : i32, i32
  }
  func.func @transform_3(%arg0: i32) -> (i32, i32) {
    %c0_i32 = arith.constant 0 : i32
    %c0_i32_0 = arith.constant 0 : i32
    %c0_i32_1 = arith.constant 0 : i32
    return %c0_i32, %c0_i32_0 : i32, i32
  }
  func.func @transform_4(%arg0: i32) -> (i32, i32) {
    %c0_i32 = arith.constant 0 : i32
    %c0_i32_0 = arith.constant 0 : i32
    %c0_i32_1 = arith.constant 0 : i32
    return %c0_i32, %c0_i32_0 : i32, i32
  }
  func.func @transform_5(%arg0: i32) -> (i32, i32) {
    %c0_i32 = arith.constant 0 : i32
    %c0_i32_0 = arith.constant 0 : i32
    %c0_i32_1 = arith.constant 0 : i32
    return %c0_i32, %c0_i32_0 : i32, i32
  }
  func.func @transform_6(%arg0: i32) -> (i32, i32) {
    %c0_i32 = arith.constant 0 : i32
    %c0_i32_0 = arith.constant 0 : i32
    %c0_i32_1 = arith.constant 0 : i32
    return %c0_i32, %c0_i32_0 : i32, i32
  }
  func.func @transform_7(%arg0: i32) -> (i32, i32) {
    %c0_i32 = arith.constant 0 : i32
    %c0_i32_0 = arith.constant 0 : i32
    %c0_i32_1 = arith.constant 0 : i32
    return %c0_i32, %c0_i32_0 : i32, i32
  }
  func.func @transform_8(%arg0: i32) -> (i32, i32) {
    %c0_i32 = arith.constant 0 : i32
    %c0_i32_0 = arith.constant 0 : i32
    %c0_i32_1 = arith.constant 0 : i32
    return %c0_i32, %c0_i32_0 : i32, i32
  }
  func.func @transform_9(%arg0: i32) -> (i32, i32) {
    %c0_i32 = arith.constant 0 : i32
    %c0_i32_0 = arith.constant 0 : i32
    %c0_i32_1 = arith.constant 0 : i32
    return %c0_i32, %c0_i32_0 : i32, i32
  }
  func.func @transform_10(%arg0: i32) -> (i32, i32) {
    %c0_i32 = arith.constant 0 : i32
    %c0_i32_0 = arith.constant 0 : i32
    %c0_i32_1 = arith.constant 0 : i32
    return %c0_i32, %c0_i32_0 : i32, i32
  }
  func.func @transform_11(%arg0: i32) -> (i32, i32) {
    %c0_i32 = arith.constant 0 : i32
    %c0_i32_0 = arith.constant 0 : i32
    %c0_i32_1 = arith.constant 0 : i32
    return %c0_i32, %c0_i32_0 : i32, i32
  }
  func.func @transform_12(%arg0: i32) -> (i32, i32) {
    %c0_i32 = arith.constant 0 : i32
    %c0_i32_0 = arith.constant 0 : i32
    %c0_i32_1 = arith.constant 0 : i32
    return %c0_i32, %c0_i32_0 : i32, i32
  }
  func.func @transform_13(%arg0: i32) -> (i32, i32) {
    %c0_i32 = arith.constant 0 : i32
    %c0_i32_0 = arith.constant 0 : i32
    %c0_i32_1 = arith.constant 0 : i32
    return %c0_i32, %c0_i32_0 : i32, i32
  }
  func.func @transform_14(%arg0: i32) -> (i32, i32) {
    %c0_i32 = arith.constant 0 : i32
    %c0_i32_0 = arith.constant 0 : i32
    %c0_i32_1 = arith.constant 0 : i32
    return %c0_i32, %c0_i32_0 : i32, i32
  }
  func.func @transform_15(%arg0: i32) -> (i32, i32) {
    %c0_i32 = arith.constant 0 : i32
    %c0_i32_0 = arith.constant 0 : i32
    %c0_i32_1 = arith.constant 0 : i32
    return %c0_i32, %c0_i32_0 : i32, i32
  }
  func.func @transform_16(%arg0: i32) -> (i32, i32) {
    %c0_i32 = arith.constant 0 : i32
    %c0_i32_0 = arith.constant 0 : i32
    %c0_i32_1 = arith.constant 0 : i32
    return %c0_i32, %c0_i32_0 : i32, i32
  }
  func.func @transform_17(%arg0: i32) -> (i32, i32) {
    %c0_i32 = arith.constant 0 : i32
    %c0_i32_0 = arith.constant 0 : i32
    %c0_i32_1 = arith.constant 0 : i32
    return %c0_i32, %c0_i32_0 : i32, i32
  }
  func.func @transform_18(%arg0: i32) -> (i32, i32) {
    %c0_i32 = arith.constant 0 : i32
    %c0_i32_0 = arith.constant 0 : i32
    %c0_i32_1 = arith.constant 0 : i32
    return %c0_i32, %c0_i32_0 : i32, i32
  }
  func.func @transform_19(%arg0: i32) -> (i32, i32) {
    %c0_i32 = arith.constant 0 : i32
    %c0_i32_0 = arith.constant 0 : i32
    %c0_i32_1 = arith.constant 0 : i32
    return %c0_i32, %c0_i32_0 : i32, i32
  }
  func.func @transform_20(%arg0: i32) -> (i32, i32) {
    %c0_i32 = arith.constant 0 : i32
    %c0_i32_0 = arith.constant 0 : i32
    %c0_i32_1 = arith.constant 0 : i32
    return %c0_i32, %c0_i32_0 : i32, i32
  }
  func.func @transform_21(%arg0: i32) -> (i32, i32) {
    %c0_i32 = arith.constant 0 : i32
    %c0_i32_0 = arith.constant 0 : i32
    return %arg0, %c0_i32 : i32, i32
  }
}

</mosaic_0001>

<bundles_post_ra>
// kernel: cnn_d_forward.1
= control target key start
LH: loop header
LB: loop body
LE: loop exit
PB: predicated region body
PF: predicated region fallthrough
CT: control target
= control target key end

     0   :  { %s2410_s0 = inlined_call_operand.vmem [shape: f32[32,96], index: 0, kind: input, shape index: {}]   ;;  %s2411_s1 = inlined_call_operand.vmem [shape: f32[32,1], index: 1, kind: input, shape index: {}]   ;;  %s2412_s2 = inlined_call_operand.hbm [shape: f32[32,64], index: 2, kind: input, shape index: {}]   ;;  %s2413_s3 = inlined_call_operand.vmem [shape: f32[96,128], index: 3, kind: input, shape index: {}]   ;;  %s2414_s4 = inlined_call_operand.vmem [shape: f32[64,128], index: 4, kind: input, shape index: {}]   ;;  %s2415_s5 = inlined_call_operand.vmem [shape: f32[1,128], index: 5, kind: input, shape index: {}]   ;;  %s2416_s6 = inlined_call_operand.vmem [shape: f32[1,128], index: 6, kind: input, shape index: {}]   ;;  %s2417_s7 = inlined_call_operand.vmem [shape: f32[1,128], index: 7, kind: input, shape index: {}]   ;;  %s2418_s8 = inlined_call_operand.vmem [shape: f32[1,128], index: 8, kind: input, shape index: {}]   ;;  %s2419_s9 = inlined_call_operand.hbm [shape: f32[8,16], index: 9, kind: input, shape index: {}]   ;;  %s2420_s10 = inlined_call_operand.vmem [shape: f32[8,1], index: 10, kind: input, shape index: {}]   ;;  %s2421_s11 = inlined_call_operand.vmem [shape: f32[16,8], index: 11, kind: input, shape index: {}]   ;;  %s2422_s12 = inlined_call_operand.vmem [shape: f32[16,1], index: 12, kind: input, shape index: {}]   ;;  %s2423_s13 = inlined_call_operand.vmem [shape: f32[1,128], index: 13, kind: input, shape index: {}]   ;;  %s2424_s14 = inlined_call_operand.vmem [shape: f32[1,128], index: 14, kind: input, shape index: {}]   ;;  %s2425_s15 = inlined_call_operand.vmem [shape: f32[128,128], index: 15, kind: input, shape index: {}]   ;;  %s2426_s16 = inlined_call_operand.vmem [shape: f32[1,128], index: 16, kind: input, shape index: {}]   ;;  %s2427_s17 = inlined_call_operand.vmem [shape: f32[128,128], index: 17, kind: input, shape index: {}]   ;;  %s2428_s18 = inlined_call_operand.vmem [shape: f32[1,128], index: 18, kind: input, shape index: {}]   ;;  %s2429_s19 = inlined_call_operand.hbm [shape: f32[128,128], index: 19, kind: input, shape index: {}]   ;;  %s2430_s20 = inlined_call_operand.hbm [shape: f32[1,128], index: 20, kind: input, shape index: {}]   ;;  %s2431_s21 = inlined_call_operand.hbm [shape: f32[32,128], index: 21, kind: output, shape index: {}]  }
   0x1   :  { %2438 = sst [smem:[#allocation15_spill]] %s2410_s0 }
   0x2   :  { %2439 = sst [smem:[#allocation16_spill]] %s2411_s1 }
   0x3   :  { %2440 = sst [smem:[#allocation17_spill]] %s2412_s2 }
   0x4   :  { %2441 = sst [smem:[#allocation18_spill]] %s2413_s3 }
   0x5   :  { %2442 = sst [smem:[#allocation19_spill]] %s2414_s4 }
   0x6   :  { %2443 = sst [smem:[#allocation20_spill]] %s2415_s5 }
   0x7   :  { %2444 = sst [smem:[#allocation21_spill]] %s2431_s21 }
   0x8   :  { %26 = vsyncpa [#allocation3], 0 }
   0x9   :  { %27 = vsyncpa [#allocation6], 0 }
   0xa   :  { %28 = vsyncpa [#allocation9], 0 }
   0xb   :  { %29 = vsyncpa [#allocation4], 0  ;;  %s1920_s2 = smov [#allocation5]   ;;  %s1921_s26 = smov [#allocation2]  }
   0xc   :  { %s64_s25 = sshll.u32 %s1920_s2, 4  ;;  %s39_s27 = sshll.u32 %s1921_s26, 4  ;;  %s65_s25 = int_to_ptr.vmem [resolvable:$true] %s64_s25  ;;  %s2041_s27 = int_to_ptr.vmem [resolvable:$true] %s39_s27 }
   0xd   :  { %s1802_s29 = scalar_lea.hbm %s2419_s9, 128 }
   0xe   :  { %p1803_p0 = scmp.ne.s32.totalorder %s2419_s9, %s1802_s29  ;;  %p1806_p1 = scmp.lt.u32.totalorder %s1802_s29, %s2419_s9 }
  0x10   :  { %p1808_p2 = pnand %p1806_p1, %p1803_p0 }
  0x12   :  { %1811 = shalt.err (!%p1808_p2)
}
  0x13   :  { %s1812_s22 = scalar_lea.vmem %s65_s25, 128  ;;  %p1817_p4 = scmp.lt.s32.totalorder %s65_s25, %s65_s25 }
  0x14   :  { %p1813_p3 = scmp.ne.s32.totalorder %s65_s25, %s1812_s22  ;;  %p1818_p5 = scmp.lt.s32.totalorder %s1812_s22, %s1812_s22 }
  0x16   :  { %p1819_p6 = por %p1818_p5, %p1817_p4 }
  0x18   :  { %p1820_p7 = pnand %p1819_p6, %p1813_p3 }
  0x1a   :  { %1823 = shalt.err (!%p1820_p7)
}
  0x1b   :  { %67 = dma.hbm_to_vmem [thread:$0]  %s2419_s9, 128, %s65_s25, [#allocation6]  }
  0x1c   :  { %s2445_s26 = sld [smem:[#allocation17_spill]] }
  0x22   :  { %s1824_s3 = scalar_lea.hbm %s2445_s26, 512 }
  0x23   :  { %p1825_p8 = scmp.ne.s32.totalorder %s2445_s26, %s1824_s3  ;;  %p1828_p9 = scmp.lt.u32.totalorder %s1824_s3, %s2445_s26 }
  0x25   :  { %p1830_p10 = pnand %p1828_p9, %p1825_p8 }
  0x27   :  { %1833 = shalt.err (!%p1830_p10)
}
  0x28   :  { %s1834_s30 = scalar_lea.vmem %s2041_s27, 512  ;;  %p1839_p12 = scmp.lt.s32.totalorder %s2041_s27, %s2041_s27 }
  0x29   :  { %p1835_p11 = scmp.ne.s32.totalorder %s2041_s27, %s1834_s30  ;;  %p1840_p13 = scmp.lt.s32.totalorder %s1834_s30, %s1834_s30 }
  0x2b   :  { %p1841_p0 = por %p1840_p13, %p1839_p12 }
  0x2d   :  { %p1842_p1 = pnand %p1841_p0, %p1835_p11 }
  0x2f   :  { %1845 = shalt.err (!%p1842_p1)
}
  0x30   :  { %s1922_s9 = smov 128   ;;  %s1923_s25 = smov 8  }
  0x31   :  { %45 = dma.hbm_to_vmem [thread:$0]  %s2445_s26, 512, %s2041_s27, [#allocation3], %s1922_s9, %s1922_s9, %s1923_s25  }
  0x32   :  { %s1924_s23 = smov [#allocation7]   ;;  %s1925_s24 = smov [#allocation8]  }
  0x33   :  { %s91_s1 = sshll.u32 %s1924_s23, 4  ;;  %s104_s2 = sshll.u32 %s1925_s24, 4  ;;  %s92_s1 = int_to_ptr.vmem [resolvable:$true] %s91_s1  ;;  %s105_s2 = int_to_ptr.vmem [resolvable:$true] %s104_s2 }
  0x34   :  { %s1846_s0 = scalar_lea.hbm %s2429_s19, 2048 }
  0x35   :  { %p1847_p2 = scmp.ne.s32.totalorder %s2429_s19, %s1846_s0  ;;  %p1850_p3 = scmp.lt.u32.totalorder %s1846_s0, %s2429_s19 }
  0x37   :  { %p1852_p4 = pnand %p1850_p3, %p1847_p2 }
  0x39   :  { %1855 = shalt.err (!%p1852_p4)
}
  0x3a   :  { %s1856_s27 = scalar_lea.vmem %s92_s1, 2048  ;;  %p1861_p6 = scmp.lt.s32.totalorder %s92_s1, %s92_s1 }
  0x3b   :  { %p1857_p5 = scmp.ne.s32.totalorder %s92_s1, %s1856_s27  ;;  %p1862_p7 = scmp.lt.s32.totalorder %s1856_s27, %s1856_s27 }
  0x3d   :  { %p1863_p8 = por %p1862_p7, %p1861_p6 }
  0x3f   :  { %p1864_p9 = pnand %p1863_p8, %p1857_p5 }
  0x41   :  { %1867 = shalt.err (!%p1864_p9)
}
  0x42   :  { %97 = dma.hbm_to_vmem [thread:$0]  %s2429_s19, 2048, %s92_s1, [#allocation6], %s1922_s9, %s1922_s9, %s1923_s25  }
  0x43   :  { %s1868_s21 = scalar_lea.hbm %s2430_s20, 16 }
  0x44   :  { %p1869_p10 = scmp.ne.s32.totalorder %s2430_s20, %s1868_s21  ;;  %p1872_p11 = scmp.lt.u32.totalorder %s1868_s21, %s2430_s20 }
  0x46   :  { %p1874_p12 = pnand %p1872_p11, %p1869_p10 }
  0x48   :  { %1877 = shalt.err (!%p1874_p12)
}
  0x49   :  { %s1878_s29 = scalar_lea.vmem %s105_s2, 16  ;;  %s1882_s4 = scalar_lea.vmem %s105_s2, 32 }
  0x4a   :  { %p1879_p13 = scmp.ne.s32.totalorder %s105_s2, %s1878_s29  ;;  %p1883_p0 = scmp.lt.s32.totalorder %s105_s2, %s105_s2 }
  0x4b   :  { %p1884_p1 = scmp.lt.s32.totalorder %s1882_s4, %s1878_s29 }
  0x4d   :  { %p1885_p2 = por %p1884_p1, %p1883_p0 }
  0x4f   :  { %p1886_p3 = pnand %p1885_p2, %p1879_p13 }
  0x51   :  { %1889 = shalt.err (!%p1886_p3)
}
  0x52   :  { %107 = dma.hbm_to_vmem [thread:$0]  %s2430_s20, 16, %s105_s2, [#allocation9]  }
  0x53   :  { %1912 = dma.done.wait [#allocation3], 512  }
  0x54   :  { %1913 = vsyncadd [#allocation3], 4294966784 }
  0x55   :  { %1914 = dma.done.wait [#allocation6], 2176  }
  0x56   :  { %1915 = vsyncadd [#allocation6], 4294965120 }
  0x57   :  { %1916 = dma.done.wait [#allocation9], 16  }
  0x58   :  { %1917 = vsyncadd [#allocation9], 4294967280  ;;  %v1926_v0 = vmov 0   ;;  %s2446_s26 = sld [smem:[#allocation19_spill]]  ;;  %vm148_vm0 = vcmask 523264   ;;  %v136_v9 = vld [vmem:[#allocation2] sm:$0xff] }
  0x59   :  { %1756 = vset.pattern.permute.xlu0 %v1926_v0  ;;  %1757 = vset.pattern.permute.xlu1 %v1926_v0  ;;  %s2447_s5 = sld [smem:[#allocation16_spill]]  ;;  %s2448_s2 = sld [smem:[#allocation18_spill]]  ;;  %v137_v23 = vld [vmem:[#allocation2 + $0x8] sm:$0xff]  ;;  %v138_v25 = vld [vmem:[#allocation2 + $0x10] sm:$0xff]  ;;  %v139_v28 = vld [vmem:[#allocation2 + $0x18] sm:$0xff]  ;;  %vm246_vm1 = vcmask 785408  }
  0x5a   :  { %1425 = vmatprep.mubr.msk.f32.mxu0 %vm148_vm0, %v136_v9  ;;  %s2449_s24 = sld [smem:[#allocation15_spill]]  ;;  %s2450_s29 = sld [smem:[#allocation20_spill]]  ;;  %v1295_v51 = vld [vmem:[%s2416_s6] ss:$0 sm:$0xff]  ;;  %vm1928_vm6 = vmmov 0   ;;  %vm480_vm7 = vcmask 130048  }
  0x5b   :  { %vm648_vm8 = vcmask 64512  }
  0x5e   :  { %v140_v1 = vld [vmem:[%s2446_s26] sm:$0xff]  ;;  %v141_v2 = vld [vmem:[%s2446_s26 + $0x8] sm:$0xff]  ;;  %v142_v3 = vld [vmem:[%s2446_s26 + $0x10] sm:$0xff] }
  0x5f   :  { %v1599_v4 = vpack.c.bf16 %v141_v2, %v140_v1  ;;  %v143_v5 = vld [vmem:[%s2446_s26 + $0x18] sm:$0xff]  ;;  %v144_v7 = vld [vmem:[%s2446_s26 + $0x20] sm:$0xff]  ;;  %v145_v8 = vld [vmem:[%s2446_s26 + $0x28] sm:$0xff] }
  0x60   :  { %v1603_v6 = vpack.c.bf16 %v143_v5, %v142_v3  ;;  %v1607_v10 = vpack.c.bf16 %v145_v8, %v144_v7  ;;  %v146_v11 = vld [vmem:[%s2446_s26 + $0x30] sm:$0xff]  ;;  %v147_v12 = vld [vmem:[%s2446_s26 + $0x38] sm:$0xff]  ;;  %v344_v14 = vld [vmem:[%s2447_s5] sm:$0xff] }
  0x61   :  { %1600 = vmatprep.subr.bf16.mxu0 %v1599_v4  ;;  %v1611_v13 = vpack.c.bf16 %v147_v12, %v146_v11  ;;  %v346_v15 = vld [vmem:[%s2447_s5 + $0x10] sm:$0xff]  ;;  %v124_v16 = vld [vmem:[%s2448_s2] sm:$0xff]  ;;  %v125_v17 = vld [vmem:[%s2448_s2 + $0x8] sm:$0xff]  ;;  %351 = vperm.xlu0 %1756, %v344_v14  }
  0x62   :  { %1602 = vmatpush3.bf16.msra.mxu0 %v1599_v4  ;;  %361 = vperm.xlu1 %1757, %v346_v15   ;;  %v345_v18 = vld [vmem:[%s2447_s5 + $0x8] sm:$0xff]  ;;  %v347_v19 = vld [vmem:[%s2447_s5 + $0x18] sm:$0xff]  ;;  %v1615_v20 = vpack.c.bf16 %v125_v17, %v124_v16  ;;  %v126_v21 = vld [vmem:[%s2448_s2 + $0x10] sm:$0xff] }
  0x63   :  { %1604 = vmatprep.subr.bf16.mxu0 %v1603_v6  ;;  %v127_v22 = vld [vmem:[%s2448_s2 + $0x18] sm:$0xff]  ;;  %v128_v26 = vld [vmem:[%s2448_s2 + $0x20] sm:$0xff]  ;;  %v129_v27 = vld [vmem:[%s2448_s2 + $0x28] sm:$0xff] }
  0x64   :  { %v1619_v24 = vpack.c.bf16 %v127_v22, %v126_v21  ;;  %v1623_v29 = vpack.c.bf16 %v129_v27, %v128_v26  ;;  %v120_v30 = vld [vmem:[%s2449_s24] sm:$0xff]  ;;  %v130_v31 = vld [vmem:[%s2448_s2 + $0x30] sm:$0xff]  ;;  %v131_v32 = vld [vmem:[%s2448_s2 + $0x38] sm:$0xff] }
  0x65   :  { %356 = vperm.xlu0 %1756, %v345_v18   ;;  %v1627_v33 = vpack.c.bf16 %v131_v32, %v130_v31  ;;  %v132_v34 = vld [vmem:[%s2448_s2 + $0x40] sm:$0xff]  ;;  %v133_v35 = vld [vmem:[%s2448_s2 + $0x48] sm:$0xff]  ;;  %v134_v37 = vld [vmem:[%s2448_s2 + $0x50] sm:$0xff] }
  0x66   :  { %1606 = vmatpush3.bf16.msra.mxu0 %v1603_v6  ;;  %366 = vperm.xlu1 %1757, %v347_v19   ;;  %v1631_v36 = vpack.c.bf16 %v133_v35, %v132_v34  ;;  %v135_v38 = vld [vmem:[%s2448_s2 + $0x58] sm:$0xff]  ;;  %v121_v40 = vld [vmem:[%s2449_s24 + $0x8] sm:$0xff]  ;;  %v122_v41 = vld [vmem:[%s2449_s24 + $0x10] sm:$0xff] }
  0x67   :  { %1608 = vmatprep.subr.bf16.mxu0 %v1607_v10  ;;  %v1635_v39 = vpack.c.bf16 %v135_v38, %v134_v37  ;;  %v123_v42 = vld [vmem:[%s2449_s24 + $0x18] sm:$0xff]  ;;  %v1294_v45 = vld [vmem:[%s2450_s29] ss:$0 sm:$0xff]  ;;  %v637_v26 = vld [vmem:[%s2422_s12 + $0x8] sm:$0xff] }
  0x68   :  { %v636_v27 = vld [vmem:[%s2422_s12] sm:$0xff] }
  0x6a   :  { %1610 = vmatpush3.bf16.msra.mxu0 %v1607_v10 }
  0x6b   :  { %1612 = vmatprep.subr.bf16.mxu0 %v1611_v13 }
  0x6e   :  { %1614 = vmatpush3.bf16.msra.mxu0 %v1611_v13 }
  0x6f   :  { %1616 = vmatprep.subr.bf16.mxu0 %v1615_v20 }
  0x71   :  { %1426 = vmatmul.mubr.msk.f32.vlgmr.msra.gmra.mrb[0].mxu0 %vm148_vm0, %v137_v23 }
  0x72   :  { %1618 = vmatpush3.bf16.msra.mxu0 %v1615_v20  ;;  %1428 = vmatprep.mubr.msk.f32.mxu0 %vm148_vm0, %v138_v25  ;;  %v474_v25 = vld [vmem:[%s2420_s10] sm:$0xff] }
  0x73   :  { %1620 = vmatprep.subr.bf16.mxu0 %v1619_v24 }
  0x75   :  { %1429 = vmatmul.mubr.msk.f32.gmra.mrb[2].mxu0 %vm148_vm0, %v139_v28  ;;  %v1927_v28 = vmov 0.0|0.0  }
  0x76   :  { %1622 = vmatpush3.bf16.msra.mxu0 %v1619_v24  ;;  %1455 = vmatprep.mubr.msk.f32.mxu0 %vm246_vm1, %v120_v30 }
  0x77   :  { %1624 = vmatprep.subr.bf16.mxu0 %v1623_v29  ;;  %1639 = vmatprep.subr.bf16.mxu1 %v1927_v28 }
  0x7a   :  { %1626 = vmatpush3.bf16.msra.mxu0 %v1623_v29  ;;  %v1929_v29 = vmov 0.0  }
  0x7b   :  { %1628 = vmatprep.subr.bf16.mxu0 %v1627_v33  ;;  %1465 = vmatprep.mubr.msk.f32.mxu1 %vm1928_vm6, %v1929_v29 }
  0x7e   :  { %1630 = vmatpush3.bf16.msra.mxu0 %v1627_v33 }
  0x7f   :  { %1632 = vmatprep.subr.bf16.mxu0 %v1631_v36 }
  0x82   :  { %1634 = vmatpush3.bf16.msra.mxu0 %v1631_v36 }
  0x83   :  { %1636 = vmatprep.subr.bf16.mxu0 %v1635_v39 }
  0x86   :  { %1638 = vmatpush3.bf16.msra.mxu0 %v1635_v39 }
  0x89   :  { %1456 = vmatmul.mubr.msk.f32.vlgmr.msra.gmra.mrb[0].mxu0 %vm246_vm1, %v121_v40 }
  0x8a   :  { %1458 = vmatprep.mubr.msk.f32.mxu0 %vm246_vm1, %v122_v41 }
  0x8d   :  { %1459 = vmatmul.mubr.msk.f32.gmra.mrb[2].mxu0 %vm246_vm1, %v123_v42 }
  0xe0   :  { %v352_v43 = vpop.permute.xlu0 %351 }
  0xe1   :  { %v362_v44 = vpop.permute.xlu1 %361  ;;  %v375_v48 = vmul.f32 %v1294_v45, %v352_v43  ;;  %v1296_v43 = vld [vmem:[%s2417_s7] ss:$0 sm:$0xff] }
  0xe2   :  { %v377_v55 = vmul.f32 %v1294_v45, %v362_v44 }
  0xe4   :  { %v357_v46 = vpop.permute.xlu0 %356 }
  0xe5   :  { %v376_v47 = vmul.f32 %v1294_v45, %v357_v46  ;;  %v367_v49 = vpop.permute.xlu1 %366  ;;  %v1297_v46 = vld [vmem:[%s2418_s8] ss:$0 sm:$0xff] }
  0xe6   :  { %v378_v54 = vmul.f32 %v1294_v45, %v367_v49 }
 0x15c   :  { %v1457_v50 = vpop.f32.mrb[0].mxu0 }
 0x15d   :  { %v380_v52 = vadd.f32 %v1457_v50, %v376_v47  ;;  %v325_v53 = vpop.f32.mrb[1].mxu0 }
 0x15e   :  { %v379_v56 = vadd.f32 %v375_v48, %v325_v53 }
 0x15f   :  { %v391_v57 = vadd.f32 %v1295_v51, %v380_v52 }
 0x160   :  { %v390_v58 = vadd.f32 %v1295_v51, %v379_v56  ;;  %v1460_v59 = vpop.f32.mrb[2].mxu0 }
 0x161   :  { %v382_v60 = vadd.f32 %v1460_v59, %v378_v54  ;;  %v335_v61 = vpop.f32.mrb[3].mxu0  ;;  %vm395_vm2 = vcmp.ge.f32.partialorder %v391_v57, 0.0  ;;  %v399_v62 = vmul.f32 0.2, %v391_v57 }
 0x162   :  { %v381_v63 = vadd.f32 %v377_v55, %v335_v61  ;;  %vm394_vm3 = vcmp.ge.f32.partialorder %v390_v58, 0.0  ;;  %v398_v0 = vmul.f32 0.2, %v390_v58 }
 0x163   :  { %v2200_v1 = vsel %vm395_vm2, %v391_v57, %v399_v62  ;;  %v393_v2 = vadd.f32 %v1295_v51, %v382_v60  ;;  %v473_v57 = vld [vmem:[#allocation5] sm:$0xff] }
 0x164   :  { %v392_v3 = vadd.f32 %v1295_v51, %v381_v63  ;;  %410 = vadd.xlane.f32.xlu1 %v2200_v1  ;;  %v2203_v4 = vsel %vm394_vm3, %v390_v58, %v398_v0  ;;  %v634_v63 = vld [vmem:[%s2421_s11] sm:$0xff] }
 0x165   :  { %408 = vadd.xlane.f32.xlu0 %v2203_v4  ;;  %v401_v7 = vmul.f32 0.2, %v393_v2  ;;  %vm397_vm5 = vcmp.ge.f32.partialorder %v393_v2, 0.0 }
 0x166   :  { %vm396_vm4 = vcmp.ge.f32.partialorder %v392_v3, 0.0  ;;  %v400_v5 = vmul.f32 0.2, %v392_v3 }
 0x167   :  { %v2209_v8 = vsel %vm397_vm5, %v393_v2, %v401_v7 }
 0x168   :  { %v2206_v6 = vsel %vm396_vm4, %v392_v3, %v400_v5 }
 0x169   :  { %412 = vadd.xlane.f32.xlu0 %v2206_v6 }
 0x16d   :  { %414 = vadd.xlane.f32.xlu0 %v2209_v8 }
 0x1f1   :  { %v411_v9 = vpop.xlane.xlu1 %410 }
 0x1f2   :  { %v418_v10 = vmul.f32 0.0078125, %v411_v9  ;;  %v409_v11 = vpop.xlane.xlu0 %408 }
 0x1f3   :  { %v417_v12 = vmul.f32 0.0078125, %v409_v11 }
 0x1f4   :  { %v422_v13 = vsub.f32 %v2200_v1, %v418_v10 }
 0x1f5   :  { %v421_v14 = vsub.f32 %v2203_v4, %v417_v12 }
 0x1f6   :  { %v413_v15 = vpop.xlane.xlu0 %412  ;;  %v426_v16 = vmul.f32 %v422_v13, %v422_v13 }
 0x1f7   :  { %v419_v17 = vmul.f32 0.0078125, %v413_v15  ;;  %v425_v18 = vmul.f32 %v421_v14, %v421_v14 }
 0x1f8   :  { %431 = vadd.xlane.f32.xlu0 %v426_v16 }
 0x1f9   :  { %v423_v19 = vsub.f32 %v2206_v6, %v419_v17  ;;  %429 = vadd.xlane.f32.xlu1 %v425_v18  ;;  %v635_v17 = vld [vmem:[%s2421_s11 + $0x8] sm:$0xff] }
 0x1fa   :  { %v415_v20 = vpop.xlane.xlu0 %414 }
 0x1fb   :  { %v420_v21 = vmul.f32 0.0078125, %v415_v20  ;;  %v427_v22 = vmul.f32 %v423_v19, %v423_v19 }
 0x1fd   :  { %v424_v23 = vsub.f32 %v2209_v8, %v420_v21  ;;  %433 = vadd.xlane.f32.xlu1 %v427_v22 }
 0x1ff   :  { %v428_v24 = vmul.f32 %v424_v23, %v424_v23 }
 0x201   :  { %435 = vadd.xlane.f32.xlu0 %v428_v24 }
 0x20e   :  { %477 = vperm.xlu1 %1757, %v474_v25  }
 0x212   :  { %645 = vperm.xlu1 %1757, %v637_v26  }
 0x217   :  { %640 = vperm.xlu0 %1756, %v636_v27  }
 0x285   :  { %v432_v30 = vpop.xlane.xlu0 %431 }
 0x286   :  { %v438_v31 = vmul.f32 0.0078125, %v432_v30  ;;  %v430_v32 = vpop.xlane.xlu1 %429 }
 0x287   :  { %v437_v33 = vmul.f32 0.0078125, %v430_v32 }
 0x288   :  { %v442_v34 = vadd.f32 1e-05, %v438_v31 }
 0x289   :  { %v441_v35 = vadd.f32 1e-05, %v437_v33 }
 0x28a   :  { %1758 = vrsqrt.f32 %v442_v34  ;;  %v434_v36 = vpop.xlane.xlu1 %433 }
 0x28b   :  { %1760 = vrsqrt.f32 %v441_v35  ;;  %v439_v37 = vmul.f32 0.0078125, %v434_v36 }
 0x28d   :  { %v443_v38 = vadd.f32 1e-05, %v439_v37 }
 0x28e   :  { %v436_v39 = vpop.xlane.xlu0 %435  ;;  %v478_v0 = vpop.permute.xlu1 %477 }
 0x28f   :  { %1762 = vrsqrt.f32 %v443_v38  ;;  %v440_v40 = vmul.f32 0.0078125, %v436_v39  ;;  %v879_v38 = vld [vmem:[%s2425_s15 + $0x20] sm:$0xff]  ;;  %v880_v39 = vld [vmem:[%s2425_s15 + $0x28] sm:$0xff] }
 0x291   :  { %v444_v41 = vadd.f32 1e-05, %v440_v40  ;;  %v1653_v40 = vpack.c.bf16 %v880_v39, %v879_v38  ;;  %v1305_v38 = vld [vmem:[%s2424_s14] ss:$0 sm:$0xff] }
 0x292   :  { %v646_v22 = vpop.permute.xlu1 %645 }
 0x293   :  { %1764 = vrsqrt.f32 %v444_v41 }
 0x294   :  { %v1759_v42 = vpop.eup %1758 }
 0x295   :  { %v1761_v44 = vpop.eup %1760  ;;  %v450_v45 = vmul.f32 %v1759_v42, %v422_v13 }
 0x296   :  { %v449_v47 = vmul.f32 %v1761_v44, %v421_v14  ;;  %v641_v24 = vpop.permute.xlu0 %640 }
 0x297   :  { %v460_v48 = vmul.f32 %v1296_v43, %v450_v45 }
 0x298   :  { %v459_v49 = vmul.f32 %v1296_v43, %v449_v47 }
 0x299   :  { %v1763_v50 = vpop.eup %1762  ;;  %v470_v51 = vadd.f32 %v1297_v46, %v460_v48 }
 0x29a   :  { %v451_v52 = vmul.f32 %v1763_v50, %v423_v19  ;;  %v469_v53 = vadd.f32 %v1297_v46, %v459_v49 }
 0x29c   :  { %v1640_v54 = vpack.c.bf16 %v470_v51, %v469_v53  ;;  %v461_v58 = vmul.f32 %v1296_v43, %v451_v52 }
 0x29d   :  { %v1765_v55 = vpop.eup %1764 }
 0x29e   :  { %v452_v56 = vmul.f32 %v1765_v55, %v424_v23  ;;  %1641 = vmatpush3.bf16.msra.mxu1 %v1640_v54  ;;  %v471_v60 = vadd.f32 %v1297_v46, %v461_v58  ;;  %v882_v58 = vld [vmem:[%s2425_s15 + $0x38] sm:$0xff] }
 0x29f   :  { %1642 = vmatprep.subr.bf16.mxu1 %v1927_v28 }
 0x2a0   :  { %v462_v59 = vmul.f32 %v1296_v43, %v452_v56 }
 0x2a1   :  { %1466 = vmatmul.mubr.msk.f32.vlgmr.msra.gmra.mrb[0].mxu1 %vm480_vm7, %v473_v57 }
 0x2a2   :  { %v472_v61 = vadd.f32 %v1297_v46, %v462_v59  ;;  %1472 = vmatprep.mubr.msk.f32.mxu1 %vm1928_vm6, %v1929_v29 }
 0x2a4   :  { %v1643_v62 = vpack.c.bf16 %v472_v61, %v471_v60  ;;  %v883_v60 = vld [vmem:[%s2425_s15 + $0x40] sm:$0xff]  ;;  %v884_v61 = vld [vmem:[%s2425_s15 + $0x48] sm:$0xff] }
 0x2a6   :  { %1644 = vmatpush3.bf16.msra.mxu1 %v1643_v62  ;;  %v1661_v62 = vpack.c.bf16 %v884_v61, %v883_v60  ;;  %v1015_v60 = vld [vmem:[%s2427_s17 + $0x60] sm:$0xff]  ;;  %v1016_v61 = vld [vmem:[%s2427_s17 + $0x68] sm:$0xff] }
 0x2a9   :  { %1473 = vmatmul.mubr.msk.f32.vlgmr.msra.gmra.mrb[2].mxu1 %vm480_vm7, %v473_v57  ;;  %v881_v57 = vld [vmem:[%s2425_s15 + $0x30] sm:$0xff] }
 0x2aa   :  { %1477 = vmatprep.mubr.msk.f32.mxu1 %vm648_vm8, %v634_v63  ;;  %v1657_v59 = vpack.c.bf16 %v882_v58, %v881_v57  ;;  %v1013_v57 = vld [vmem:[%s2427_s17 + $0x50] sm:$0xff]  ;;  %v1014_v58 = vld [vmem:[%s2427_s17 + $0x58] sm:$0xff] }
 0x374   :  { %v550_v2 = vpop.f32.mrb[0].mxu1 }
 0x375   :  { %v551_v3 = vadd.f32 %v550_v2, %v478_v0  ;;  %v1467_v5 = vpop.f32.mrb[1].mxu1 }
 0x376   :  { %v888_v5 = vld [vmem:[%s2425_s15 + $0x68] sm:$0xff] }
 0x377   :  { %v626_v7 = vmul.f32 0.70710677, %v551_v3  ;;  %v624_v14 = vmul.f32 0.5, %v551_v3  ;;  %v887_v3 = vld [vmem:[%s2425_s15 + $0x60] sm:$0xff] }
 0x379   :  { %1766 = verf.f32 %v626_v7  ;;  %v1669_v7 = vpack.c.bf16 %v888_v5, %v887_v3  ;;  %v1135_v3 = vld [vmem:[#allocation7] sm:$0xff]  ;;  %v1136_v5 = vld [vmem:[#allocation7 + $0x8] sm:$0xff] }
 0x37c   :  { %v620_v9 = vpop.f32.mrb[2].mxu1 }
 0x37d   :  { %v621_v10 = vadd.f32 %v620_v9, %v478_v0  ;;  %v1474_v11 = vpop.f32.mrb[3].mxu1  ;;  %v886_v0 = vld [vmem:[%s2425_s15 + $0x58] sm:$0xff]  ;;  %v889_v9 = vld [vmem:[%s2425_s15 + $0x70] sm:$0xff] }
 0x37f   :  { %v627_v12 = vmul.f32 0.70710677, %v621_v10  ;;  %v625_v19 = vmul.f32 0.5, %v621_v10  ;;  %v890_v10 = vld [vmem:[%s2425_s15 + $0x78] sm:$0xff] }
 0x380   :  { %v1673_v11 = vpack.c.bf16 %v890_v10, %v889_v9  ;;  %v1709_v9 = vpack.c.bf16 %v1136_v5, %v1135_v3  ;;  %v1138_v10 = vld [vmem:[#allocation7 + $0x18] sm:$0xff] }
 0x381   :  { %1768 = verf.f32 %v627_v12  ;;  %v1003_v12 = vld [vmem:[%s2427_s17] sm:$0xff] }
 0x383   :  { %v1767_v13 = vpop.eup %1766 }
 0x384   :  { %v630_v15 = vadd.f32 1.0, %v1767_v13  ;;  %v1004_v13 = vld [vmem:[%s2427_s17 + $0x8] sm:$0xff] }
 0x386   :  { %v632_v16 = vmul.f32 %v630_v15, %v624_v14  ;;  %v1005_v14 = vld [vmem:[%s2427_s17 + $0x10] sm:$0xff]  ;;  %v1677_v15 = vpack.c.bf16 %v1004_v13, %v1003_v12  ;;  %v1306_v12 = vld [vmem:[%s2426_s16] ss:$0 sm:$0xff] }
 0x388   :  { %1475 = vmatprep.subr.mxu1 %v632_v16  ;;  %1678 = vmatprep.subr.bf16.mxu0 %v1677_v15 }
 0x389   :  { %1476 = vmatpush3.msra.mxu1 %v632_v16  ;;  %v1006_v16 = vld [vmem:[%s2427_s17 + $0x18] sm:$0xff]  ;;  %1680 = vmatpush3.bf16.msra.mxu0 %v1677_v15 }
 0x38a   :  { %1478 = vmatmul.mubr.msk.f32.vlgmr.msra.gmra.mrb[4].mxu1 %vm648_vm8, %v635_v17 }
 0x38b   :  { %v1769_v18 = vpop.eup %1768  ;;  %1482 = vmatprep.mubr.msk.f32.mxu1 %vm648_vm8, %v634_v63  ;;  %v885_v63 = vld [vmem:[%s2425_s15 + $0x50] sm:$0xff] }
 0x38c   :  { %v631_v20 = vadd.f32 1.0, %v1769_v18  ;;  %v1665_v2 = vpack.c.bf16 %v886_v0, %v885_v63  ;;  %v1007_v18 = vld [vmem:[%s2427_s17 + $0x20] sm:$0xff]  ;;  %v1017_v63 = vld [vmem:[%s2427_s17 + $0x70] sm:$0xff]  ;;  %v1018_v0 = vld [vmem:[%s2427_s17 + $0x78] sm:$0xff] }
 0x38e   :  { %v633_v21 = vmul.f32 %v631_v20, %v625_v19  ;;  %v1008_v19 = vld [vmem:[%s2427_s17 + $0x28] sm:$0xff] }
 0x38f   :  { %v1685_v20 = vpack.c.bf16 %v1008_v19, %v1007_v18 }
 0x390   :  { %1480 = vmatprep.subr.mxu1 %v633_v21 }
 0x391   :  { %1481 = vmatpush3.msra.mxu1 %v633_v21 }
 0x392   :  { %1483 = vmatmul.mubr.msk.f32.vlgmr.msra.gmra.mrb[6].mxu1 %vm648_vm8, %v635_v17  ;;  %v1681_v17 = vpack.c.bf16 %v1006_v16, %v1005_v14 }
 0x394   :  { %1682 = vmatprep.subr.bf16.mxu0 %v1681_v17 }
 0x395   :  { %1684 = vmatpush3.bf16.msra.mxu0 %v1681_v17 }
 0x396   :  { %1686 = vmatprep.subr.bf16.mxu0 %v1685_v20 }
 0x399   :  { %1688 = vmatpush3.bf16.msra.mxu0 %v1685_v20 }
 0x45d   :  { %v1479_v23 = vpop.f32.mrb[4].mxu1 }
 0x45e   :  { %v727_v25 = vadd.f32 %v1479_v23, %v646_v22  ;;  %v721_v26 = vpop.f32.mrb[5].mxu1 }
 0x45f   :  { %v722_v27 = vadd.f32 %v721_v26, %v641_v24 }
 0x460   :  { %v2244_v28 = vadd.f32 %v727_v25, %v2200_v1  ;;  %v875_v1 = vld [vmem:[%s2425_s15] sm:$0xff] }
 0x461   :  { %v2247_v29 = vadd.f32 %v722_v27, %v2203_v4  ;;  %v876_v4 = vld [vmem:[%s2425_s15 + $0x8] sm:$0xff] }
 0x462   :  { %813 = vadd.xlane.f32.xlu0 %v2244_v28  ;;  %v1645_v36 = vpack.c.bf16 %v876_v4, %v875_v1 }
 0x463   :  { %811 = vadd.xlane.f32.xlu1 %v2247_v29 }
 0x464   :  { %1646 = vmatprep.subr.bf16.mxu1 %v1645_v36 }
 0x465   :  { %v1484_v30 = vpop.f32.mrb[6].mxu1  ;;  %1648 = vmatpush3.bf16.msra.mxu1 %v1645_v36 }
 0x466   :  { %v802_v31 = vadd.f32 %v1484_v30, %v646_v22  ;;  %v796_v32 = vpop.f32.mrb[7].mxu1 }
 0x467   :  { %v797_v33 = vadd.f32 %v796_v32, %v641_v24 }
 0x468   :  { %v2252_v34 = vadd.f32 %v802_v31, %v2209_v8  ;;  %v877_v8 = vld [vmem:[%s2425_s15 + $0x10] sm:$0xff] }
 0x469   :  { %v2255_v35 = vadd.f32 %v797_v33, %v2206_v6  ;;  %v878_v6 = vld [vmem:[%s2425_s15 + $0x18] sm:$0xff] }
 0x46a   :  { %817 = vadd.xlane.f32.xlu1 %v2252_v34  ;;  %v1649_v37 = vpack.c.bf16 %v878_v6, %v877_v8  ;;  %v1304_v8 = vld [vmem:[%s2423_s13] ss:$0 sm:$0xff] }
 0x46b   :  { %815 = vadd.xlane.f32.xlu0 %v2255_v35 }
 0x46c   :  { %1650 = vmatprep.subr.bf16.mxu1 %v1649_v37 }
 0x46d   :  { %1652 = vmatpush3.bf16.msra.mxu1 %v1649_v37 }
 0x46e   :  { %1654 = vmatprep.subr.bf16.mxu1 %v1653_v40 }
 0x471   :  { %1656 = vmatpush3.bf16.msra.mxu1 %v1653_v40 }
 0x472   :  { %1658 = vmatprep.subr.bf16.mxu1 %v1657_v59 }
 0x475   :  { %1660 = vmatpush3.bf16.msra.mxu1 %v1657_v59  ;;  %v1697_v59 = vpack.c.bf16 %v1014_v58, %v1013_v57  ;;  %v1150_v57 = vld [vmem:[#allocation7 + $0x78] sm:$0xff] }
 0x476   :  { %1662 = vmatprep.subr.bf16.mxu1 %v1661_v62 }
 0x479   :  { %1664 = vmatpush3.bf16.msra.mxu1 %v1661_v62  ;;  %v1701_v62 = vpack.c.bf16 %v1016_v61, %v1015_v60 }
 0x47a   :  { %1666 = vmatprep.subr.bf16.mxu1 %v1665_v2 }
 0x47d   :  { %1668 = vmatpush3.bf16.msra.mxu1 %v1665_v2  ;;  %v1705_v2 = vpack.c.bf16 %v1018_v0, %v1017_v63 }
 0x47e   :  { %1670 = vmatprep.subr.bf16.mxu1 %v1669_v7 }
 0x481   :  { %1672 = vmatpush3.bf16.msra.mxu1 %v1669_v7  ;;  %v1137_v7 = vld [vmem:[#allocation7 + $0x10] sm:$0xff] }
 0x482   :  { %1674 = vmatprep.subr.bf16.mxu1 %v1673_v11 }
 0x485   :  { %1676 = vmatpush3.bf16.msra.mxu1 %v1673_v11  ;;  %v1713_v11 = vpack.c.bf16 %v1138_v10, %v1137_v7 }
 0x486   :  { %1710 = vmatprep.subr.bf16.mxu1 %v1709_v9 }
 0x4ef   :  { %v814_v41 = vpop.xlane.xlu0 %813 }
 0x4f0   :  { %v820_v42 = vmul.f32 0.0078125, %v814_v41  ;;  %v812_v43 = vpop.xlane.xlu1 %811 }
 0x4f1   :  { %v819_v44 = vmul.f32 0.0078125, %v812_v43 }
 0x4f2   :  { %v2278_v45 = vsub.f32 %v2244_v28, %v820_v42 }
 0x4f3   :  { %v2281_v46 = vsub.f32 %v2247_v29, %v819_v44 }
 0x4f4   :  { %v828_v47 = vmul.f32 %v2278_v45, %v2278_v45 }
 0x4f5   :  { %v827_v48 = vmul.f32 %v2281_v46, %v2281_v46 }
 0x4f6   :  { %833 = vadd.xlane.f32.xlu1 %v828_v47 }
 0x4f7   :  { %831 = vadd.xlane.f32.xlu0 %v827_v48  ;;  %v818_v49 = vpop.xlane.xlu1 %817 }
 0x4f8   :  { %v822_v50 = vmul.f32 0.0078125, %v818_v49  ;;  %v816_v51 = vpop.xlane.xlu0 %815 }
 0x4f9   :  { %v821_v52 = vmul.f32 0.0078125, %v816_v51  ;;  %v1009_v51 = vld [vmem:[%s2427_s17 + $0x30] sm:$0xff] }
 0x4fa   :  { %v2288_v53 = vsub.f32 %v2252_v34, %v822_v50 }
 0x4fb   :  { %v2291_v54 = vsub.f32 %v2255_v35, %v821_v52  ;;  %v1010_v52 = vld [vmem:[%s2427_s17 + $0x38] sm:$0xff] }
 0x4fc   :  { %v830_v55 = vmul.f32 %v2288_v53, %v2288_v53 }
 0x4fd   :  { %v829_v56 = vmul.f32 %v2291_v54, %v2291_v54 }
 0x4fe   :  { %837 = vadd.xlane.f32.xlu1 %v830_v55  ;;  %v1689_v55 = vpack.c.bf16 %v1010_v52, %v1009_v51  ;;  %v1146_v51 = vld [vmem:[#allocation7 + $0x58] sm:$0xff] }
 0x4ff   :  { %835 = vadd.xlane.f32.xlu0 %v829_v56 }
 0x500   :  { %1690 = vmatprep.subr.bf16.mxu0 %v1689_v55 }
 0x501   :  { %1692 = vmatpush3.bf16.msra.mxu0 %v1689_v55  ;;  %v1147_v55 = vld [vmem:[#allocation7 + $0x60] sm:$0xff] }
 0x583   :  { %v834_v21 = vpop.xlane.xlu1 %833 }
 0x584   :  { %v840_v22 = vmul.f32 0.0078125, %v834_v21  ;;  %v832_v23 = vpop.xlane.xlu0 %831 }
 0x585   :  { %v839_v24 = vmul.f32 0.0078125, %v832_v23 }
 0x586   :  { %v844_v25 = vadd.f32 1e-05, %v840_v22 }
 0x587   :  { %v843_v26 = vadd.f32 1e-05, %v839_v24 }
 0x588   :  { %1770 = vrsqrt.f32 %v844_v25 }
 0x589   :  { %1772 = vrsqrt.f32 %v843_v26 }
 0x58b   :  { %v838_v27 = vpop.xlane.xlu1 %837 }
 0x58c   :  { %v842_v30 = vmul.f32 0.0078125, %v838_v27  ;;  %v836_v31 = vpop.xlane.xlu0 %835 }
 0x58d   :  { %v841_v32 = vmul.f32 0.0078125, %v836_v31 }
 0x58e   :  { %v846_v33 = vadd.f32 1e-05, %v842_v30 }
 0x58f   :  { %v845_v1 = vadd.f32 1e-05, %v841_v32 }
 0x590   :  { %1774 = vrsqrt.f32 %v846_v33 }
 0x591   :  { %1776 = vrsqrt.f32 %v845_v1 }
 0x592   :  { %v1771_v4 = vpop.eup %1770 }
 0x593   :  { %v1773_v36 = vpop.eup %1772  ;;  %v852_v6 = vmul.f32 %v1771_v4, %v2278_v45 }
 0x594   :  { %v851_v37 = vmul.f32 %v1773_v36, %v2281_v46 }
 0x595   :  { %v862_v39 = vmul.f32 %v1304_v8, %v852_v6 }
 0x596   :  { %v861_v40 = vmul.f32 %v1304_v8, %v851_v37 }
 0x597   :  { %v872_v42 = vadd.f32 %v1305_v38, %v862_v39 }
 0x598   :  { %v871_v41 = vadd.f32 %v1305_v38, %v861_v40 }
 0x59a   :  { %v1775_v43 = vpop.eup %1774  ;;  %1517 = vmatprep.mubr.f32.mxu1 %v871_v41  ;;  %v1139_v41 = vld [vmem:[#allocation7 + $0x20] sm:$0xff] }
 0x59b   :  { %v1777_v44 = vpop.eup %1776  ;;  %1518 = vmatmul.mubr.f32.vlgmr.msra.gmra.mrb[8].mxu1 %v872_v42  ;;  %v854_v47 = vmul.f32 %v1775_v43, %v2288_v53  ;;  %v1011_v53 = vld [vmem:[%s2427_s17 + $0x40] sm:$0xff]  ;;  %v1140_v42 = vld [vmem:[#allocation7 + $0x28] sm:$0xff] }
 0x59c   :  { %v853_v48 = vmul.f32 %v1777_v44, %v2291_v54  ;;  %v1012_v54 = vld [vmem:[%s2427_s17 + $0x48] sm:$0xff]  ;;  %1712 = vmatpush3.bf16.msra.mxu1 %v1709_v9  ;;  %v1717_v43 = vpack.c.bf16 %v1140_v42, %v1139_v41  ;;  %v1141_v44 = vld [vmem:[#allocation7 + $0x30] sm:$0xff] }
 0x59d   :  { %v864_v49 = vmul.f32 %v1304_v8, %v854_v47  ;;  %v1693_v56 = vpack.c.bf16 %v1012_v54, %v1011_v53  ;;  %1714 = vmatprep.subr.bf16.mxu1 %v1713_v11  ;;  %v1142_v47 = vld [vmem:[#allocation7 + $0x38] sm:$0xff]  ;;  %v1148_v53 = vld [vmem:[#allocation7 + $0x68] sm:$0xff] }
 0x59e   :  { %v863_v45 = vmul.f32 %v1304_v8, %v853_v48  ;;  %v1721_v48 = vpack.c.bf16 %v1142_v47, %v1141_v44  ;;  %v1733_v54 = vpack.c.bf16 %v1148_v53, %v1147_v55 }
 0x59f   :  { %v874_v46 = vadd.f32 %v1305_v38, %v864_v49  ;;  %1694 = vmatprep.subr.bf16.mxu0 %v1693_v56  ;;  %v1143_v49 = vld [vmem:[#allocation7 + $0x40] sm:$0xff] }
 0x5a0   :  { %v873_v50 = vadd.f32 %v1305_v38, %v863_v45  ;;  %1696 = vmatpush3.bf16.msra.mxu0 %v1693_v56  ;;  %1716 = vmatpush3.bf16.msra.mxu1 %v1713_v11  ;;  %v1144_v45 = vld [vmem:[#allocation7 + $0x48] sm:$0xff]  ;;  %v1149_v56 = vld [vmem:[#allocation7 + $0x70] sm:$0xff] }
 0x5a1   :  { %1698 = vmatprep.subr.bf16.mxu0 %v1697_v59  ;;  %1718 = vmatprep.subr.bf16.mxu1 %v1717_v43  ;;  %v1737_v58 = vpack.c.bf16 %v1150_v57, %v1149_v56 }
 0x5a2   :  { %1520 = vmatprep.mubr.f32.mxu1 %v873_v50  ;;  %v1725_v50 = vpack.c.bf16 %v1144_v45, %v1143_v49 }
 0x5a3   :  { %1521 = vmatmul.mubr.f32.gmra.mrb[10].mxu1 %v874_v46  ;;  %v1145_v46 = vld [vmem:[#allocation7 + $0x50] sm:$0xff] }
 0x5a4   :  { %1700 = vmatpush3.bf16.msra.mxu0 %v1697_v59  ;;  %1720 = vmatpush3.bf16.msra.mxu1 %v1717_v43  ;;  %v1729_v52 = vpack.c.bf16 %v1146_v51, %v1145_v46  ;;  %v1307_v59 = vld [vmem:[%s2428_s18] ss:$0 sm:$0xff]  ;;  %s1930_s18 = smov [#allocation10]  }
 0x5a5   :  { %1702 = vmatprep.subr.bf16.mxu0 %v1701_v62  ;;  %1722 = vmatprep.subr.bf16.mxu1 %v1721_v48  ;;  %s1272_s8 = sshll.u32 %s1930_s18, 4  ;;  %s1273_s8 = int_to_ptr.vmem [resolvable:$true] %s1272_s8 }
 0x5a6   :  { %s1890_s21 = scalar_lea.vmem %s1273_s8, 512  ;;  %p1895_p5 = scmp.lt.s32.totalorder %s1273_s8, %s1273_s8 }
 0x5a7   :  { %p1891_p4 = scmp.ne.s32.totalorder %s1273_s8, %s1890_s21  ;;  %p1896_p6 = scmp.lt.s32.totalorder %s1890_s21, %s1890_s21 }
 0x5a8   :  { %1704 = vmatpush3.bf16.msra.mxu0 %v1701_v62  ;;  %1724 = vmatpush3.bf16.msra.mxu1 %v1721_v48 }
 0x5a9   :  { %1706 = vmatprep.subr.bf16.mxu0 %v1705_v2  ;;  %1726 = vmatprep.subr.bf16.mxu1 %v1725_v50  ;;  %p1897_p7 = por %p1896_p6, %p1895_p5 }
 0x5ab   :  { %p1898_p8 = pnand %p1897_p7, %p1891_p4 }
 0x5ac   :  { %1708 = vmatpush3.bf16.msra.mxu0 %v1705_v2  ;;  %1728 = vmatpush3.bf16.msra.mxu1 %v1725_v50 }
 0x5ad   :  { %1730 = vmatprep.subr.bf16.mxu1 %v1729_v52 }
 0x5b0   :  { %1732 = vmatpush3.bf16.msra.mxu1 %v1729_v52 }
 0x5b1   :  { %1734 = vmatprep.subr.bf16.mxu1 %v1733_v54 }
 0x5b4   :  { %1736 = vmatpush3.bf16.msra.mxu1 %v1733_v54 }
 0x5b5   :  { %1738 = vmatprep.subr.bf16.mxu1 %v1737_v58 }
 0x5b8   :  { %1740 = vmatpush3.bf16.msra.mxu1 %v1737_v58 }
 0x66e   :  { %v1519_v13 = vpop.f32.mrb[8].mxu1 }
 0x66f   :  { %v970_v14 = vadd.f32 %v1519_v13, %v1306_v12  ;;  %v964_v15 = vpop.f32.mrb[9].mxu1 }
 0x670   :  { %v965_v16 = vadd.f32 %v1306_v12, %v964_v15 }
 0x671   :  { %v988_v17 = vmul.f32 0.70710677, %v970_v14  ;;  %v984_v32 = vmul.f32 0.5, %v970_v14 }
 0x672   :  { %v987_v18 = vmul.f32 0.70710677, %v965_v16  ;;  %v983_v30 = vmul.f32 0.5, %v965_v16 }
 0x673   :  { %1778 = verf.f32 %v988_v17 }
 0x674   :  { %1780 = verf.f32 %v987_v18 }
 0x676   :  { %v1522_v19 = vpop.f32.mrb[10].mxu1 }
 0x677   :  { %v980_v20 = vadd.f32 %v1522_v19, %v1306_v12  ;;  %v974_v21 = vpop.f32.mrb[11].mxu1 }
 0x678   :  { %v975_v22 = vadd.f32 %v1306_v12, %v974_v21 }
 0x679   :  { %v990_v23 = vmul.f32 0.70710677, %v980_v20  ;;  %v986_v38 = vmul.f32 0.5, %v980_v20 }
 0x67a   :  { %v989_v24 = vmul.f32 0.70710677, %v975_v22  ;;  %v985_v6 = vmul.f32 0.5, %v975_v22 }
 0x67b   :  { %1782 = verf.f32 %v990_v23 }
 0x67c   :  { %1784 = verf.f32 %v989_v24 }
 0x67d   :  { %v1779_v25 = vpop.eup %1778 }
 0x67e   :  { %v1781_v26 = vpop.eup %1780  ;;  %v996_v27 = vadd.f32 1.0, %v1779_v25 }
 0x67f   :  { %v995_v31 = vadd.f32 1.0, %v1781_v26 }
 0x680   :  { %v1000_v1 = vmul.f32 %v996_v27, %v984_v32 }
 0x681   :  { %v999_v33 = vmul.f32 %v995_v31, %v983_v30  ;;  %v1308_v30 = vld [vmem:[#allocation8] ss:$0 sm:$0xff] }
 0x683   :  { %1555 = vmatprep.mubr.f32.mxu0 %v999_v33 }
 0x684   :  { %1556 = vmatmul.mubr.f32.vlgmr.msra.gmra.mrb[4].mxu0 %v1000_v1 }
 0x685   :  { %v1783_v4 = vpop.eup %1782 }
 0x686   :  { %v1785_v8 = vpop.eup %1784  ;;  %v998_v36 = vadd.f32 1.0, %v1783_v4 }
 0x687   :  { %v997_v37 = vadd.f32 1.0, %v1785_v8 }
 0x688   :  { %v1002_v40 = vmul.f32 %v998_v36, %v986_v38 }
 0x689   :  { %v1001_v39 = vmul.f32 %v997_v37, %v985_v6 }
 0x68b   :  { %1558 = vmatprep.mubr.f32.mxu0 %v1001_v39 }
 0x68c   :  { %1559 = vmatmul.mubr.f32.gmra.mrb[6].mxu0 %v1002_v40 }
 0x757   :  { %v1557_v60 = vpop.f32.mrb[4].mxu0 }
 0x758   :  { %v1098_v61 = vadd.f32 %v1557_v60, %v1307_v59  ;;  %v1092_v62 = vpop.f32.mrb[5].mxu0 }
 0x759   :  { %v1093_v63 = vadd.f32 %v1307_v59, %v1092_v62 }
 0x75a   :  { %v1112_v0 = vadd.f32 %v1098_v61, %v2244_v28 }
 0x75b   :  { %v1111_v2 = vadd.f32 %v1093_v63, %v2247_v29 }
 0x75c   :  { %v1120_v3 = vmul.f32 0.70710677, %v1112_v0  ;;  %v1116_v19 = vmul.f32 0.5, %v1112_v0 }
 0x75d   :  { %v1119_v5 = vmul.f32 0.70710677, %v1111_v2  ;;  %v1115_v29 = vmul.f32 0.5, %v1111_v2 }
 0x75e   :  { %1786 = verf.f32 %v1120_v3 }
 0x75f   :  { %1788 = verf.f32 %v1119_v5  ;;  %v1560_v7 = vpop.f32.mrb[6].mxu0 }
 0x760   :  { %v1108_v9 = vadd.f32 %v1560_v7, %v1307_v59  ;;  %v1102_v10 = vpop.f32.mrb[7].mxu0 }
 0x761   :  { %v1103_v11 = vadd.f32 %v1307_v59, %v1102_v10 }
 0x762   :  { %v1114_v12 = vadd.f32 %v1108_v9, %v2252_v34 }
 0x763   :  { %v1113_v13 = vadd.f32 %v1103_v11, %v2255_v35 }
 0x764   :  { %v1122_v14 = vmul.f32 0.70710677, %v1114_v12  ;;  %v1118_v35 = vmul.f32 0.5, %v1114_v12 }
 0x765   :  { %v1121_v15 = vmul.f32 0.70710677, %v1113_v13  ;;  %v1117_v34 = vmul.f32 0.5, %v1113_v13 }
 0x766   :  { %1790 = verf.f32 %v1122_v14 }
 0x767   :  { %1792 = verf.f32 %v1121_v15 }
 0x768   :  { %v1787_v16 = vpop.eup %1786 }
 0x769   :  { %v1789_v28 = vpop.eup %1788  ;;  %v1128_v17 = vadd.f32 1.0, %v1787_v16 }
 0x76a   :  { %v1127_v18 = vadd.f32 1.0, %v1789_v28 }
 0x76b   :  { %v1132_v21 = vmul.f32 %v1128_v17, %v1116_v19 }
 0x76c   :  { %v1131_v20 = vmul.f32 %v1127_v18, %v1115_v29 }
 0x76e   :  { %1593 = vmatprep.mubr.f32.mxu1 %v1131_v20 }
 0x76f   :  { %1594 = vmatmul.mubr.f32.vlgmr.msra.gmra.mrb[12].mxu1 %v1132_v21 }
 0x770   :  { %v1791_v22 = vpop.eup %1790 }
 0x771   :  { %v1793_v23 = vpop.eup %1792  ;;  %v1130_v24 = vadd.f32 1.0, %v1791_v22 }
 0x772   :  { %v1129_v25 = vadd.f32 1.0, %v1793_v23 }
 0x773   :  { %v1134_v27 = vmul.f32 %v1130_v24, %v1118_v35 }
 0x774   :  { %v1133_v26 = vmul.f32 %v1129_v25, %v1117_v34 }
 0x776   :  { %1596 = vmatprep.mubr.f32.mxu1 %v1133_v26 }
 0x777   :  { %1597 = vmatmul.mubr.f32.gmra.mrb[14].mxu1 %v1134_v27 }
 0x842   :  { %v1595_v31 = vpop.f32.mrb[12].mxu1 }
 0x843   :  { %v1230_v32 = vadd.f32 %v1595_v31, %v1308_v30  ;;  %v1224_v33 = vpop.f32.mrb[13].mxu1 }
 0x844   :  { %v1225_v1 = vadd.f32 %v1308_v30, %v1224_v33 }
 0x845   :  { %v1248_v4 = vmul.f32 0.70710677, %v1230_v32  ;;  %v1244_v43 = vmul.f32 0.5, %v1230_v32 }
 0x846   :  { %v1247_v8 = vmul.f32 0.70710677, %v1225_v1  ;;  %v1243_v47 = vmul.f32 0.5, %v1225_v1 }
 0x847   :  { %1794 = verf.f32 %v1248_v4 }
 0x848   :  { %1796 = verf.f32 %v1247_v8 }
 0x84a   :  { %v1598_v36 = vpop.f32.mrb[14].mxu1 }
 0x84b   :  { %v1240_v6 = vadd.f32 %v1598_v36, %v1308_v30  ;;  %v1234_v37 = vpop.f32.mrb[15].mxu1 }
 0x84c   :  { %v1235_v38 = vadd.f32 %v1308_v30, %v1234_v37 }
 0x84d   :  { %v1250_v39 = vmul.f32 0.70710677, %v1240_v6  ;;  %v1246_v51 = vmul.f32 0.5, %v1240_v6 }
 0x84e   :  { %v1249_v40 = vmul.f32 0.70710677, %v1235_v38  ;;  %v1245_v55 = vmul.f32 0.5, %v1235_v38 }
 0x84f   :  { %1798 = verf.f32 %v1250_v39 }
 0x850   :  { %1800 = verf.f32 %v1249_v40 }
 0x851   :  { %v1795_v41 = vpop.eup %1794 }
 0x852   :  { %v1797_v42 = vpop.eup %1796  ;;  %v1256_v44 = vadd.f32 1.0, %v1795_v41 }
 0x853   :  { %v1255_v48 = vadd.f32 1.0, %v1797_v42 }
 0x854   :  { %v1260_v49 = vmul.f32 %v1256_v44, %v1244_v43 }
 0x855   :  { %v1259_v45 = vmul.f32 %v1255_v48, %v1243_v47 }
 0x856   :  { %1264 = vst [vmem:[#allocation10 + $0x8] sm:$0xff] %v1260_v49 }
 0x857   :  { %1263 = vst [vmem:[#allocation10] sm:$0xff] %v1259_v45 }
 0x859   :  { %v1799_v50 = vpop.eup %1798 }
 0x85a   :  { %v1801_v46 = vpop.eup %1800  ;;  %v1258_v52 = vadd.f32 1.0, %v1799_v50 }
 0x85b   :  { %v1257_v53 = vadd.f32 1.0, %v1801_v46 }
 0x85c   :  { %v1262_v54 = vmul.f32 %v1258_v52, %v1246_v51 }
 0x85d   :  { %v1261_v56 = vmul.f32 %v1257_v53, %v1245_v55 }
 0x85e   :  { %1266 = vst [vmem:[#allocation10 + $0x18] sm:$0xff] %v1262_v54 }
 0x85f   :  { %1265 = vst [vmem:[#allocation10 + $0x10] sm:$0xff] %v1261_v56 }
 0x860   :  { %1901 = shalt.err (!%p1898_p8)
}
 0x861   :  { %s2451_s13 = sld [smem:[#allocation21_spill]] }
 0x867   :  { %s1902_s14 = scalar_lea.hbm %s2451_s13, 512 }
 0x868   :  { %p1903_p9 = scmp.ne.s32.totalorder %s2451_s13, %s1902_s14  ;;  %p1906_p10 = scmp.lt.u32.totalorder %s1902_s14, %s2451_s13 }
 0x86a   :  { %p1908_p11 = pnand %p1906_p10, %p1903_p9 }
 0x86c   :  { %1911 = shalt.err (!%p1908_p11)
}
 0x86d   :  { %1278 = dma.vmem_to_hbm [thread:$0]  %s1273_s8, 512, %s2451_s13, [#allocation4], %s1922_s9, %s1922_s9, %s1923_s25  }
 0x86e   :  { %1918 = dma.done.wait [#allocation4], 512  }
 0x86f   :  { %1919 = vsyncadd [#allocation4], 4294966784 }
 0x870   :  { %1282 = vsyncpa [#allocation3], 1 }
 0x871   :  { %1283 = vsyncpa [#allocation6], 1 }
 0x872   :  { %1284 = vsyncpa [#allocation9], 1 }
 0x873   :  { %1285 = vsyncpa [#allocation4], 1 }

</bundles_post_ra>
